<compile_context>
chip_gen: v6e
topology: v6e:2x2x1
jax: 0.10.0
libtpu: 0.0.40
codegen_flags: <defaults>
</compile_context>

<pallas_src>
import jax
import jax.numpy as jnp
from jax.experimental import pallas as pl
from jax.experimental.pallas import tpu as pltpu


PARAM_ORDER = ("w_in", "b_in", "gamma", "beta",
               "wq", "wk", "wv", "wo", "bo", "wpo", "bpo")


def make_kernel(bb, n_lg, n_sm, lg_dim, sm_dim, heads, dim_head, depth):
    scale = float(dim_head) ** -0.5
    inner = heads * dim_head
    n_ctx = n_lg + n_sm
    rows_lg = bb * n_lg
    rows_ctx = bb * n_ctx

    def kernel(lg_ref, sm_ref,
               w_in_ref, b_in_ref, g_ref, bt_ref,
               wq_ref, wk_ref, wv_ref, wo_ref, bo_ref, wpo_ref, bpo_ref,
               out_ref, ctx_ref):
        # Context scratch: sm rows written once per batch block (f32 so the
        # row-range stores stay aligned to the (8,128) f32 sublane tile);
        # the normed/projected lg rows are overwritten inside the depth loop.
        ctx_ref[:, n_lg:, :] = sm_ref[...].astype(jnp.float32)

        lg0 = lg_ref[...].reshape(rows_lg, lg_dim).astype(jnp.float32)

        def layer(d, lg):
            # ProjectInOut.project_in : Linear(lg_dim -> sm_dim)
            x = jnp.dot(lg.astype(jnp.bfloat16), w_in_ref[d],
                        preferred_element_type=jnp.float32) + b_in_ref[d]

            # PreNorm : LayerNorm(sm_dim), eps = 1e-5 (f32 statistics)
            mean = jnp.mean(x, axis=-1, keepdims=True)
            xc = x - mean
            var = jnp.mean(xc * xc, axis=-1, keepdims=True)
            xn = xc * jax.lax.rsqrt(var + 1e-5) * g_ref[d] + bt_ref[d]

            # kv_include_self=True : context = [normed projected lg ; sm]
            ctx_ref[:, :n_lg, :] = xn.reshape(bb, n_lg, sm_dim)
            ctx_bf = ctx_ref[...].reshape(rows_ctx, sm_dim).astype(jnp.bfloat16)
            xn_bf = xn.astype(jnp.bfloat16)

            # Attention projections (to_q / to_k / to_v have no bias),
            # flattened over the whole batch block for MXU row occupancy.
            q = jnp.dot(xn_bf, wq_ref[d], preferred_element_type=jnp.float32)
            k = jnp.dot(ctx_bf, wk_ref[d], preferred_element_type=jnp.float32)
            v = jnp.dot(ctx_bf, wv_ref[d], preferred_element_type=jnp.float32)

            # Head-batched scaled dot-product attention, one batch element at a
            # time (bb is small; static unroll keeps 3-D einsums / transposes,
            # which lower cleanly on Mosaic).
            outs = []
            for b in range(bb):
                qb = q[b * n_lg:(b + 1) * n_lg]
                kb = k[b * n_ctx:(b + 1) * n_ctx]
                vb = v[b * n_ctx:(b + 1) * n_ctx]
                q3 = jnp.transpose(qb.reshape(n_lg, heads, dim_head),
                                   (1, 0, 2)).astype(jnp.bfloat16)
                k3 = jnp.transpose(kb.reshape(n_ctx, heads, dim_head),
                                   (1, 0, 2)).astype(jnp.bfloat16)
                v3 = jnp.transpose(vb.reshape(n_ctx, heads, dim_head),
                                   (1, 0, 2)).astype(jnp.bfloat16)

                dots = jnp.einsum("hid,hjd->hij", q3, k3,
                                  preferred_element_type=jnp.float32) * scale
                dots = dots - jnp.max(dots, axis=-1, keepdims=True)
                e = jnp.exp(dots)
                p = e / jnp.sum(e, axis=-1, keepdims=True)   # exact softmax
                o3 = jnp.einsum("hij,hjd->hid", p.astype(jnp.bfloat16), v3,
                                preferred_element_type=jnp.float32)
                outs.append(jnp.transpose(o3, (1, 0, 2)).reshape(n_lg, inner))
            o = outs[0] if bb == 1 else jnp.concatenate(outs, axis=0)

            # Attention.to_out : Linear(inner -> sm_dim) + bias (Dropout(0)=id)
            o = jnp.dot(o.astype(jnp.bfloat16), wo_ref[d],
                        preferred_element_type=jnp.float32) + bo_ref[d]
            # ProjectInOut.project_out : Linear(sm_dim -> lg_dim)
            o = jnp.dot(o.astype(jnp.bfloat16), wpo_ref[d],
                        preferred_element_type=jnp.float32) + bpo_ref[d]

            return lg + o                                     # residual in f32

        if depth <= 8:
            lg_fin = lg0
            for d in range(depth):       # static unroll -> static weight index
                lg_fin = layer(d, lg_fin)
        else:
            lg_fin = jax.lax.fori_loop(0, depth, layer, lg0)

        out_ref[...] = lg_fin.reshape(bb, n_lg, lg_dim).astype(out_ref.dtype)

    return kernel


def _pick_batch_block(B, batch_block):
    bb = max(1, min(batch_block, B))
    if B >= 2:
        bb = min(bb, B // 2)   # keep >= 2 parallel grid blocks (v7x: 2 TCs)
    bb = max(bb, 1)
    while B % bb:
        bb -= 1
    return bb


def cross_transformer_fusion(sm_tokens, lg_tokens, params, heads, dim_head,
                             batch_block=8):
    B, n_lg, lg_dim = lg_tokens.shape
    _, n_sm, sm_dim = sm_tokens.shape
    depth = params["w_in"].shape[0]
    bb = _pick_batch_block(B, batch_block)

    ws = [params[name] for name in PARAM_ORDER]

    def stack_spec(arr):
        # full weight stack VMEM-resident; constant index -> single HBM fetch
        return pl.BlockSpec(arr.shape, lambda b: (0, 0, 0))

    kernel = make_kernel(bb, n_lg, n_sm, lg_dim, sm_dim, heads, dim_head, depth)

    return pl.pallas_call(
        kernel,
        out_shape=jax.ShapeDtypeStruct((B, n_lg, lg_dim), lg_tokens.dtype),
        grid=(B // bb,),
        in_specs=[
            pl.BlockSpec((bb, n_lg, lg_dim), lambda b: (b, 0, 0)),
            pl.BlockSpec((bb, n_sm, sm_dim), lambda b: (b, 0, 0)),
        ] + [stack_spec(w) for w in ws],
        out_specs=pl.BlockSpec((bb, n_lg, lg_dim), lambda b: (b, 0, 0)),
        scratch_shapes=[pltpu.VMEM((bb, n_lg + n_sm, sm_dim), jnp.float32)],
        compiler_params=pltpu.CompilerParams(
            dimension_semantics=("parallel",)),
    )(lg_tokens, sm_tokens, *ws)


def init_params(key, depth, sm_dim, lg_dim, heads, dim_head):
    # Per-layer params stacked along a leading depth axis.  Matmul weights are
    # bf16 (MXU-native on v6e/v7x, halves weight DMA); biases / LayerNorm
    # parameters stay f32 (VPU math stays f32).
    inner = heads * dim_head
    ks = jax.random.split(key, 11)

    def mat(k, r, c):
        return (jax.random.normal(k, (depth, r, c), jnp.float32) * 0.05
                ).astype(jnp.bfloat16)

    def vec(k, c):
        return jax.random.normal(k, (depth, 1, c), jnp.float32) * 0.05

    return {
        "w_in":  mat(ks[0], lg_dim, sm_dim),
        "b_in":  vec(ks[1], sm_dim),
        "gamma": 1.0 + vec(ks[2], sm_dim),
        "beta":  vec(ks[3], sm_dim),
        "wq":    mat(ks[4], sm_dim, inner),
        "wk":    mat(ks[5], sm_dim, inner),
        "wv":    mat(ks[6], sm_dim, inner),
        "wo":    mat(ks[7], inner, sm_dim),
        "bo":    vec(ks[8], sm_dim),
        "wpo":   mat(ks[9], sm_dim, lg_dim),
        "bpo":   vec(ks[10], lg_dim),
    }


def reference(sm, lg, params, heads, dim_head):
    # pure-JAX f32 reference matching the PyTorch forward semantics
    scale = float(dim_head) ** -0.5
    inner = heads * dim_head
    depth = params["w_in"].shape[0]
    for d in range(depth):
        p = {k: v[d].astype(jnp.float32) for k, v in params.items()}
        x = lg @ p["w_in"] + p["b_in"]
        mean = x.mean(-1, keepdims=True)
        var = ((x - mean) ** 2).mean(-1, keepdims=True)
        xn = (x - mean) / jnp.sqrt(var + 1e-5) * p["gamma"] + p["beta"]
        ctx = jnp.concatenate([xn, sm], axis=1)
        q, k, v = xn @ p["wq"], ctx @ p["wk"], ctx @ p["wv"]

        def split(t):
            b, n, _ = t.shape
            return t.reshape(b, n, heads, dim_head).transpose(0, 2, 1, 3)

        qh, kh, vh = split(q), split(k), split(v)
        attn = jax.nn.softmax(jnp.einsum("bhid,bhjd->bhij", qh, kh) * scale, -1)
        o = jnp.einsum("bhij,bhjd->bhid", attn, vh)
        o = o.transpose(0, 2, 1, 3).reshape(o.shape[0], -1, inner)
        o = o @ p["wo"] + p["bo"]
        o = o @ p["wpo"] + p["bpo"]
        lg = o + lg
    return lg


if __name__ == "__main__":
    # small shapes consistent with the module's forward
    N_SM, N_LG = 8, 8
    SM_DIM, LG_DIM = 32, 64
    DEPTH, HEADS, DIM_HEAD = 2, 2, 16

    key = jax.random.PRNGKey(0)
    k_sm, k_lg, k_par = jax.random.split(key, 3)
    params = init_params(k_par, DEPTH, SM_DIM, LG_DIM, HEADS, DIM_HEAD)

    # B=2 -> bb=1 (two parallel grid blocks); B=4 -> bb=2 (batch-blocked path)
    for B in (2, 4):
        ksm = jax.random.fold_in(k_sm, B)
        klg = jax.random.fold_in(k_lg, B)
        sm_tokens = jax.random.normal(ksm, (B, N_SM, SM_DIM), jnp.float32)
        lg_tokens = jax.random.normal(klg, (B, N_LG, LG_DIM), jnp.float32)

        out = cross_transformer_fusion(sm_tokens, lg_tokens, params,
                                       HEADS, DIM_HEAD)
        out = jax.block_until_ready(out)

        ref = reference(sm_tokens, lg_tokens, params, HEADS, DIM_HEAD)
        assert out.shape == (B, N_LG, LG_DIM)
        # bf16 MXU inputs (f32 accumulation / residual) -> modest tolerance
        err = float(jnp.max(jnp.abs(out - ref)))
        assert err < 2e-2, f"B={B}: max abs err = {err}"

    print("KERNEL_OK")
</pallas_src>

<mosaic_0001>
module attributes {stable_mosaic.version = 11 : i64} {
  func.func @kernel(%arg0: i32, %arg1: memref<1x8x64xf32, #tpu.memory_space<vmem>>, %arg2: memref<1x8x32xf32, #tpu.memory_space<vmem>>, %arg3: memref<2x64x32xbf16, #tpu.memory_space<vmem>>, %arg4: memref<2x1x32xf32, #tpu.memory_space<vmem>>, %arg5: memref<2x1x32xf32, #tpu.memory_space<vmem>>, %arg6: memref<2x1x32xf32, #tpu.memory_space<vmem>>, %arg7: memref<2x32x32xbf16, #tpu.memory_space<vmem>>, %arg8: memref<2x32x32xbf16, #tpu.memory_space<vmem>>, %arg9: memref<2x32x32xbf16, #tpu.memory_space<vmem>>, %arg10: memref<2x32x32xbf16, #tpu.memory_space<vmem>>, %arg11: memref<2x1x32xf32, #tpu.memory_space<vmem>>, %arg12: memref<2x32x64xbf16, #tpu.memory_space<vmem>>, %arg13: memref<2x1x64xf32, #tpu.memory_space<vmem>>, %arg14: memref<1x8x64xf32, #tpu.memory_space<vmem>>, %arg15: memref<1x16x32xf32, #tpu.memory_space<vmem>>) attributes {dimension_semantics = [#tpu.dimension_semantics<parallel>], iteration_bounds = array<i64: 2>, scalar_prefetch = 0 : i64, scratch_operands = 1 : i64, tpu.core_type = #tpu.core_type<tc>, window_params = [{transform_indices = @transform_0, window_bounds = array<i64: 1, 8, 64>}, {transform_indices = @transform_1, window_bounds = array<i64: 1, 8, 32>}, {pipeline_mode = #tpu.pipeline_mode<synchronous>, transform_indices = @transform_2, window_bounds = array<i64: 2, 64, 32>}, {pipeline_mode = #tpu.pipeline_mode<synchronous>, transform_indices = @transform_3, window_bounds = array<i64: 2, 1, 32>}, {pipeline_mode = #tpu.pipeline_mode<synchronous>, transform_indices = @transform_4, window_bounds = array<i64: 2, 1, 32>}, {pipeline_mode = #tpu.pipeline_mode<synchronous>, transform_indices = @transform_5, window_bounds = array<i64: 2, 1, 32>}, {pipeline_mode = #tpu.pipeline_mode<synchronous>, transform_indices = @transform_6, window_bounds = array<i64: 2, 32, 32>}, {pipeline_mode = #tpu.pipeline_mode<synchronous>, transform_indices = @transform_7, window_bounds = array<i64: 2, 32, 32>}, {pipeline_mode = #tpu.pipeline_mode<synchronous>, transform_indices = @transform_8, window_bounds = array<i64: 2, 32, 32>}, {pipeline_mode = #tpu.pipeline_mode<synchronous>, transform_indices = @transform_9, window_bounds = array<i64: 2, 32, 32>}, {pipeline_mode = #tpu.pipeline_mode<synchronous>, transform_indices = @transform_10, window_bounds = array<i64: 2, 1, 32>}, {pipeline_mode = #tpu.pipeline_mode<synchronous>, transform_indices = @transform_11, window_bounds = array<i64: 2, 32, 64>}, {pipeline_mode = #tpu.pipeline_mode<synchronous>, transform_indices = @transform_12, window_bounds = array<i64: 2, 1, 64>}, {transform_indices = @transform_13, window_bounds = array<i64: 1, 8, 64>}]} {
    %c0 = arith.constant 0 : index
    %c0_0 = arith.constant 0 : index
    %c0_1 = arith.constant 0 : index
    %0 = vector.load %arg2[%c0, %c0_0, %c0_1] : memref<1x8x32xf32, #tpu.memory_space<vmem>>, vector<1x8x32xf32>
    %c0_2 = arith.constant 0 : index
    %c8 = arith.constant 8 : index
    %c0_3 = arith.constant 0 : index
    %1 = vector.load %arg15[%c0_2, %c8, %c0_3] : memref<1x16x32xf32, #tpu.memory_space<vmem>>, vector<1x8x32xf32>
    tpu.vector_store %arg15[%c0_2, %c8, %c0_3], %0 {strides = array<i32>} : memref<1x16x32xf32, #tpu.memory_space<vmem>>, vector<1x8x32xf32>,
    %c0_4 = arith.constant 0 : index
    %c0_5 = arith.constant 0 : index
    %c0_6 = arith.constant 0 : index
    %2 = vector.load %arg1[%c0_4, %c0_5, %c0_6] : memref<1x8x64xf32, #tpu.memory_space<vmem>>, vector<1x8x64xf32>
    %3 = vector.shape_cast %2 : vector<1x8x64xf32> to vector<8x64xf32>
    %4 = arith.truncf %3 : vector<8x64xf32> to vector<8x64xbf16>
    %c0_7 = arith.constant 0 : index
    %c0_8 = arith.constant 0 : index
    %c0_9 = arith.constant 0 : index
    %5 = vector.load %arg3[%c0_7, %c0_8, %c0_9] : memref<2x64x32xbf16, #tpu.memory_space<vmem>>, vector<1x64x32xbf16>
    %6 = vector.shape_cast %5 : vector<1x64x32xbf16> to vector<64x32xbf16>
    %cst = arith.constant dense<0.000000e+00> : vector<8x32xf32>
    %7 = tpu.matmul %4, %6, %cst {dimension_numbers = #tpu.dot_dimension_numbers<[1], [0], [0], [1], [0, 0, 1, 1], [], []>} : vector<8x64xbf16>, vector<64x32xbf16>, vector<8x32xf32> -> vector<8x32xf32>
    %c0_10 = arith.constant 0 : index
    %c0_11 = arith.constant 0 : index
    %c0_12 = arith.constant 0 : index
    %8 = vector.load %arg4[%c0_10, %c0_11, %c0_12] : memref<2x1x32xf32, #tpu.memory_space<vmem>>, vector<1x1x32xf32>
    %9 = vector.shape_cast %8 : vector<1x1x32xf32> to vector<1x32xf32>
    %10 = vector.broadcast %9 : vector<1x32xf32> to vector<8x32xf32>
    %11 = arith.addf %7, %10 : vector<8x32xf32>
    %cst_13 = arith.constant dense<0.000000e+00> : vector<8xf32>
    %12 = vector.multi_reduction <add>, %11, %cst_13 [1] : vector<8x32xf32> to vector<8xf32>
    %13 = vector.shape_cast %12 : vector<8xf32> to vector<8x1xf32>
    %cst_14 = arith.constant 3.200000e+01 : f32
    %14 = vector.broadcast %cst_14 : f32 to vector<8x1xf32>
    %15 = arith.divf %13, %14 : vector<8x1xf32>
    %16 = vector.broadcast %15 : vector<8x1xf32> to vector<8x32xf32>
    %17 = arith.subf %11, %16 : vector<8x32xf32>
    %18 = arith.mulf %17, %17 : vector<8x32xf32>
    %cst_15 = arith.constant dense<0.000000e+00> : vector<8xf32>
    %19 = vector.multi_reduction <add>, %18, %cst_15 [1] : vector<8x32xf32> to vector<8xf32>
    %20 = vector.shape_cast %19 : vector<8xf32> to vector<8x1xf32>
    %cst_16 = arith.constant 3.200000e+01 : f32
    %21 = vector.broadcast %cst_16 : f32 to vector<8x1xf32>
    %22 = arith.divf %20, %21 : vector<8x1xf32>
    %cst_17 = arith.constant 9.99999974E-6 : f32
    %23 = vector.broadcast %cst_17 : f32 to vector<8x1xf32>
    %24 = arith.addf %22, %23 : vector<8x1xf32>
    %25 = math.rsqrt %24 : vector<8x1xf32>
    %26 = vector.broadcast %25 : vector<8x1xf32> to vector<8x32xf32>
    %27 = arith.mulf %17, %26 : vector<8x32xf32>
    %c0_18 = arith.constant 0 : index
    %c0_19 = arith.constant 0 : index
    %c0_20 = arith.constant 0 : index
    %28 = vector.load %arg5[%c0_18, %c0_19, %c0_20] : memref<2x1x32xf32, #tpu.memory_space<vmem>>, vector<1x1x32xf32>
    %29 = vector.shape_cast %28 : vector<1x1x32xf32> to vector<1x32xf32>
    %30 = vector.broadcast %29 : vector<1x32xf32> to vector<8x32xf32>
    %31 = arith.mulf %27, %30 : vector<8x32xf32>
    %c0_21 = arith.constant 0 : index
    %c0_22 = arith.constant 0 : index
    %c0_23 = arith.constant 0 : index
    %32 = vector.load %arg6[%c0_21, %c0_22, %c0_23] : memref<2x1x32xf32, #tpu.memory_space<vmem>>, vector<1x1x32xf32>
    %33 = vector.shape_cast %32 : vector<1x1x32xf32> to vector<1x32xf32>
    %34 = vector.broadcast %33 : vector<1x32xf32> to vector<8x32xf32>
    %35 = arith.addf %31, %34 : vector<8x32xf32>
    %36 = vector.shape_cast %35 : vector<8x32xf32> to vector<1x8x32xf32>
    %c0_24 = arith.constant 0 : index
    %c0_25 = arith.constant 0 : index
    %c0_26 = arith.constant 0 : index
    %37 = vector.load %arg15[%c0_24, %c0_25, %c0_26] : memref<1x16x32xf32, #tpu.memory_space<vmem>>, vector<1x8x32xf32>
    tpu.vector_store %arg15[%c0_24, %c0_25, %c0_26], %36 {strides = array<i32>} : memref<1x16x32xf32, #tpu.memory_space<vmem>>, vector<1x8x32xf32>,
    %c0_27 = arith.constant 0 : index
    %c0_28 = arith.constant 0 : index
    %c0_29 = arith.constant 0 : index
    %38 = vector.load %arg15[%c0_27, %c0_28, %c0_29] : memref<1x16x32xf32, #tpu.memory_space<vmem>>, vector<1x16x32xf32>
    %39 = vector.shape_cast %38 : vector<1x16x32xf32> to vector<16x32xf32>
    %40 = arith.truncf %39 : vector<16x32xf32> to vector<16x32xbf16>
    %41 = arith.truncf %35 : vector<8x32xf32> to vector<8x32xbf16>
    %c0_30 = arith.constant 0 : index
    %c0_31 = arith.constant 0 : index
    %c0_32 = arith.constant 0 : index
    %42 = vector.load %arg7[%c0_30, %c0_31, %c0_32] : memref<2x32x32xbf16, #tpu.memory_space<vmem>>, vector<1x32x32xbf16>
    %43 = vector.shape_cast %42 : vector<1x32x32xbf16> to vector<32x32xbf16>
    %cst_33 = arith.constant dense<0.000000e+00> : vector<8x32xf32>
    %44 = tpu.matmul %41, %43, %cst_33 {dimension_numbers = #tpu.dot_dimension_numbers<[1], [0], [0], [1], [0, 0, 1, 1], [], []>} : vector<8x32xbf16>, vector<32x32xbf16>, vector<8x32xf32> -> vector<8x32xf32>
    %c0_34 = arith.constant 0 : index
    %c0_35 = arith.constant 0 : index
    %c0_36 = arith.constant 0 : index
    %45 = vector.load %arg8[%c0_34, %c0_35, %c0_36] : memref<2x32x32xbf16, #tpu.memory_space<vmem>>, vector<1x32x32xbf16>
    %46 = vector.shape_cast %45 : vector<1x32x32xbf16> to vector<32x32xbf16>
    %cst_37 = arith.constant dense<0.000000e+00> : vector<16x32xf32>
    %47 = tpu.matmul %40, %46, %cst_37 {dimension_numbers = #tpu.dot_dimension_numbers<[1], [0], [0], [1], [0, 0, 1, 1], [], []>} : vector<16x32xbf16>, vector<32x32xbf16>, vector<16x32xf32> -> vector<16x32xf32>
    %c0_38 = arith.constant 0 : index
    %c0_39 = arith.constant 0 : index
    %c0_40 = arith.constant 0 : index
    %48 = vector.load %arg9[%c0_38, %c0_39, %c0_40] : memref<2x32x32xbf16, #tpu.memory_space<vmem>>, vector<1x32x32xbf16>
    %49 = vector.shape_cast %48 : vector<1x32x32xbf16> to vector<32x32xbf16>
    %cst_41 = arith.constant dense<0.000000e+00> : vector<16x32xf32>
    %50 = tpu.matmul %40, %49, %cst_41 {dimension_numbers = #tpu.dot_dimension_numbers<[1], [0], [0], [1], [0, 0, 1, 1], [], []>} : vector<16x32xbf16>, vector<32x32xbf16>, vector<16x32xf32> -> vector<16x32xf32>
    %51 = vector.shape_cast %44 : vector<8x32xf32> to vector<8x2x16xf32>
    %52 = tpu.transpose %51, [1, 0, 2] : vector<8x2x16xf32> -> vector<2x8x16xf32>
    %53 = arith.truncf %52 : vector<2x8x16xf32> to vector<2x8x16xbf16>
    %54 = vector.shape_cast %47 : vector<16x32xf32> to vector<16x2x16xf32>
    %55 = tpu.transpose %54, [1, 0, 2] : vector<16x2x16xf32> -> vector<2x16x16xf32>
    %56 = arith.truncf %55 : vector<2x16x16xf32> to vector<2x16x16xbf16>
    %57 = vector.shape_cast %50 : vector<16x32xf32> to vector<16x2x16xf32>
    %58 = tpu.transpose %57, [1, 0, 2] : vector<16x2x16xf32> -> vector<2x16x16xf32>
    %59 = arith.truncf %58 : vector<2x16x16xf32> to vector<2x16x16xbf16>
    "tpu.trace_start"() <{level = 10 : i32, message = "hid,hjd->hij"}> : () -> ()
    %cst_42 = arith.constant dense<0.000000e+00> : vector<2x8x16xf32>
    %60 = tpu.matmul %53, %56, %cst_42 {dimension_numbers = #tpu.dot_dimension_numbers<[2], [2], [1], [1], [0, 0, 0, 1, 1, 1], [0], [0]>} : vector<2x8x16xbf16>, vector<2x16x16xbf16>, vector<2x8x16xf32> -> vector<2x8x16xf32>
    "tpu.trace_stop"() : () -> ()
    %cst_43 = arith.constant 2.500000e-01 : f32
    %61 = vector.broadcast %cst_43 : f32 to vector<2x8x16xf32>
    %62 = arith.mulf %60, %61 : vector<2x8x16xf32>
    %cst_44 = arith.constant dense<0xFF800000> : vector<2x8xf32>
    %63 = vector.multi_reduction <maximumf>, %62, %cst_44 [2] : vector<2x8x16xf32> to vector<2x8xf32>
    %64 = vector.shape_cast %63 : vector<2x8xf32> to vector<2x8x1xf32>
    %65 = vector.broadcast %64 : vector<2x8x1xf32> to vector<2x8x16xf32>
    %66 = arith.subf %62, %65 : vector<2x8x16xf32>
    %67 = math.exp %66 : vector<2x8x16xf32>
    %cst_45 = arith.constant dense<0.000000e+00> : vector<2x8xf32>
    %68 = vector.multi_reduction <add>, %67, %cst_45 [2] : vector<2x8x16xf32> to vector<2x8xf32>
    %69 = vector.shape_cast %68 : vector<2x8xf32> to vector<2x8x1xf32>
    %70 = vector.broadcast %69 : vector<2x8x1xf32> to vector<2x8x16xf32>
    %71 = arith.divf %67, %70 : vector<2x8x16xf32>
    %72 = arith.truncf %71 : vector<2x8x16xf32> to vector<2x8x16xbf16>
    "tpu.trace_start"() <{level = 10 : i32, message = "hij,hjd->hid"}> : () -> ()
    %cst_46 = arith.constant dense<0.000000e+00> : vector<2x8x16xf32>
    %73 = tpu.matmul %72, %59, %cst_46 {dimension_numbers = #tpu.dot_dimension_numbers<[2], [1], [1], [2], [0, 0, 0, 1, 1, 2], [0], [0]>} : vector<2x8x16xbf16>, vector<2x16x16xbf16>, vector<2x8x16xf32> -> vector<2x8x16xf32>
    "tpu.trace_stop"() : () -> ()
    %74 = tpu.transpose %73, [1, 0, 2] : vector<2x8x16xf32> -> vector<8x2x16xf32>
    %75 = vector.shape_cast %74 : vector<8x2x16xf32> to vector<8x32xf32>
    %76 = arith.truncf %75 : vector<8x32xf32> to vector<8x32xbf16>
    %c0_47 = arith.constant 0 : index
    %c0_48 = arith.constant 0 : index
    %c0_49 = arith.constant 0 : index
    %77 = vector.load %arg10[%c0_47, %c0_48, %c0_49] : memref<2x32x32xbf16, #tpu.memory_space<vmem>>, vector<1x32x32xbf16>
    %78 = vector.shape_cast %77 : vector<1x32x32xbf16> to vector<32x32xbf16>
    %cst_50 = arith.constant dense<0.000000e+00> : vector<8x32xf32>
    %79 = tpu.matmul %76, %78, %cst_50 {dimension_numbers = #tpu.dot_dimension_numbers<[1], [0], [0], [1], [0, 0, 1, 1], [], []>} : vector<8x32xbf16>, vector<32x32xbf16>, vector<8x32xf32> -> vector<8x32xf32>
    %c0_51 = arith.constant 0 : index
    %c0_52 = arith.constant 0 : index
    %c0_53 = arith.constant 0 : index
    %80 = vector.load %arg11[%c0_51, %c0_52, %c0_53] : memref<2x1x32xf32, #tpu.memory_space<vmem>>, vector<1x1x32xf32>
    %81 = vector.shape_cast %80 : vector<1x1x32xf32> to vector<1x32xf32>
    %82 = vector.broadcast %81 : vector<1x32xf32> to vector<8x32xf32>
    %83 = arith.addf %79, %82 : vector<8x32xf32>
    %84 = arith.truncf %83 : vector<8x32xf32> to vector<8x32xbf16>
    %c0_54 = arith.constant 0 : index
    %c0_55 = arith.constant 0 : index
    %c0_56 = arith.constant 0 : index
    %85 = vector.load %arg12[%c0_54, %c0_55, %c0_56] : memref<2x32x64xbf16, #tpu.memory_space<vmem>>, vector<1x32x64xbf16>
    %86 = vector.shape_cast %85 : vector<1x32x64xbf16> to vector<32x64xbf16>
    %cst_57 = arith.constant dense<0.000000e+00> : vector<8x64xf32>
    %87 = tpu.matmul %84, %86, %cst_57 {dimension_numbers = #tpu.dot_dimension_numbers<[1], [0], [0], [1], [0, 0, 1, 1], [], []>} : vector<8x32xbf16>, vector<32x64xbf16>, vector<8x64xf32> -> vector<8x64xf32>
    %c0_58 = arith.constant 0 : index
    %c0_59 = arith.constant 0 : index
    %c0_60 = arith.constant 0 : index
    %88 = vector.load %arg13[%c0_58, %c0_59, %c0_60] : memref<2x1x64xf32, #tpu.memory_space<vmem>>, vector<1x1x64xf32>
    %89 = vector.shape_cast %88 : vector<1x1x64xf32> to vector<1x64xf32>
    %90 = vector.broadcast %89 : vector<1x64xf32> to vector<8x64xf32>
    %91 = arith.addf %87, %90 : vector<8x64xf32>
    %92 = arith.addf %3, %91 : vector<8x64xf32>
    %93 = arith.truncf %92 : vector<8x64xf32> to vector<8x64xbf16>
    %c1 = arith.constant 1 : index
    %c0_61 = arith.constant 0 : index
    %c0_62 = arith.constant 0 : index
    %94 = vector.load %arg3[%c1, %c0_61, %c0_62] : memref<2x64x32xbf16, #tpu.memory_space<vmem>>, vector<1x64x32xbf16>
    %95 = vector.shape_cast %94 : vector<1x64x32xbf16> to vector<64x32xbf16>
    %cst_63 = arith.constant dense<0.000000e+00> : vector<8x32xf32>
    %96 = tpu.matmul %93, %95, %cst_63 {dimension_numbers = #tpu.dot_dimension_numbers<[1], [0], [0], [1], [0, 0, 1, 1], [], []>} : vector<8x64xbf16>, vector<64x32xbf16>, vector<8x32xf32> -> vector<8x32xf32>
    %c1_64 = arith.constant 1 : index
    %c0_65 = arith.constant 0 : index
    %c0_66 = arith.constant 0 : index
    %97 = vector.load %arg4[%c1_64, %c0_65, %c0_66] : memref<2x1x32xf32, #tpu.memory_space<vmem>>, vector<1x1x32xf32>
    %98 = vector.shape_cast %97 : vector<1x1x32xf32> to vector<1x32xf32>
    %99 = vector.broadcast %98 : vector<1x32xf32> to vector<8x32xf32>
    %100 = arith.addf %96, %99 : vector<8x32xf32>
    %cst_67 = arith.constant dense<0.000000e+00> : vector<8xf32>
    %101 = vector.multi_reduction <add>, %100, %cst_67 [1] : vector<8x32xf32> to vector<8xf32>
    %102 = vector.shape_cast %101 : vector<8xf32> to vector<8x1xf32>
    %cst_68 = arith.constant 3.200000e+01 : f32
    %103 = vector.broadcast %cst_68 : f32 to vector<8x1xf32>
    %104 = arith.divf %102, %103 : vector<8x1xf32>
    %105 = vector.broadcast %104 : vector<8x1xf32> to vector<8x32xf32>
    %106 = arith.subf %100, %105 : vector<8x32xf32>
    %107 = arith.mulf %106, %106 : vector<8x32xf32>
    %cst_69 = arith.constant dense<0.000000e+00> : vector<8xf32>
    %108 = vector.multi_reduction <add>, %107, %cst_69 [1] : vector<8x32xf32> to vector<8xf32>
    %109 = vector.shape_cast %108 : vector<8xf32> to vector<8x1xf32>
    %cst_70 = arith.constant 3.200000e+01 : f32
    %110 = vector.broadcast %cst_70 : f32 to vector<8x1xf32>
    %111 = arith.divf %109, %110 : vector<8x1xf32>
    %cst_71 = arith.constant 9.99999974E-6 : f32
    %112 = vector.broadcast %cst_71 : f32 to vector<8x1xf32>
    %113 = arith.addf %111, %112 : vector<8x1xf32>
    %114 = math.rsqrt %113 : vector<8x1xf32>
    %115 = vector.broadcast %114 : vector<8x1xf32> to vector<8x32xf32>
    %116 = arith.mulf %106, %115 : vector<8x32xf32>
    %c1_72 = arith.constant 1 : index
    %c0_73 = arith.constant 0 : index
    %c0_74 = arith.constant 0 : index
    %117 = vector.load %arg5[%c1_72, %c0_73, %c0_74] : memref<2x1x32xf32, #tpu.memory_space<vmem>>, vector<1x1x32xf32>
    %118 = vector.shape_cast %117 : vector<1x1x32xf32> to vector<1x32xf32>
    %119 = vector.broadcast %118 : vector<1x32xf32> to vector<8x32xf32>
    %120 = arith.mulf %116, %119 : vector<8x32xf32>
    %c1_75 = arith.constant 1 : index
    %c0_76 = arith.constant 0 : index
    %c0_77 = arith.constant 0 : index
    %121 = vector.load %arg6[%c1_75, %c0_76, %c0_77] : memref<2x1x32xf32, #tpu.memory_space<vmem>>, vector<1x1x32xf32>
    %122 = vector.shape_cast %121 : vector<1x1x32xf32> to vector<1x32xf32>
    %123 = vector.broadcast %122 : vector<1x32xf32> to vector<8x32xf32>
    %124 = arith.addf %120, %123 : vector<8x32xf32>
    %125 = vector.shape_cast %124 : vector<8x32xf32> to vector<1x8x32xf32>
    %c0_78 = arith.constant 0 : index
    %c0_79 = arith.constant 0 : index
    %c0_80 = arith.constant 0 : index
    %126 = vector.load %arg15[%c0_78, %c0_79, %c0_80] : memref<1x16x32xf32, #tpu.memory_space<vmem>>, vector<1x8x32xf32>
    tpu.vector_store %arg15[%c0_78, %c0_79, %c0_80], %125 {strides = array<i32>} : memref<1x16x32xf32, #tpu.memory_space<vmem>>, vector<1x8x32xf32>,
    %c0_81 = arith.constant 0 : index
    %c0_82 = arith.constant 0 : index
    %c0_83 = arith.constant 0 : index
    %127 = vector.load %arg15[%c0_81, %c0_82, %c0_83] : memref<1x16x32xf32, #tpu.memory_space<vmem>>, vector<1x16x32xf32>
    %128 = vector.shape_cast %127 : vector<1x16x32xf32> to vector<16x32xf32>
    %129 = arith.truncf %128 : vector<16x32xf32> to vector<16x32xbf16>
    %130 = arith.truncf %124 : vector<8x32xf32> to vector<8x32xbf16>
    %c1_84 = arith.constant 1 : index
    %c0_85 = arith.constant 0 : index
    %c0_86 = arith.constant 0 : index
    %131 = vector.load %arg7[%c1_84, %c0_85, %c0_86] : memref<2x32x32xbf16, #tpu.memory_space<vmem>>, vector<1x32x32xbf16>
    %132 = vector.shape_cast %131 : vector<1x32x32xbf16> to vector<32x32xbf16>
    %cst_87 = arith.constant dense<0.000000e+00> : vector<8x32xf32>
    %133 = tpu.matmul %130, %132, %cst_87 {dimension_numbers = #tpu.dot_dimension_numbers<[1], [0], [0], [1], [0, 0, 1, 1], [], []>} : vector<8x32xbf16>, vector<32x32xbf16>, vector<8x32xf32> -> vector<8x32xf32>
    %c1_88 = arith.constant 1 : index
    %c0_89 = arith.constant 0 : index
    %c0_90 = arith.constant 0 : index
    %134 = vector.load %arg8[%c1_88, %c0_89, %c0_90] : memref<2x32x32xbf16, #tpu.memory_space<vmem>>, vector<1x32x32xbf16>
    %135 = vector.shape_cast %134 : vector<1x32x32xbf16> to vector<32x32xbf16>
    %cst_91 = arith.constant dense<0.000000e+00> : vector<16x32xf32>
    %136 = tpu.matmul %129, %135, %cst_91 {dimension_numbers = #tpu.dot_dimension_numbers<[1], [0], [0], [1], [0, 0, 1, 1], [], []>} : vector<16x32xbf16>, vector<32x32xbf16>, vector<16x32xf32> -> vector<16x32xf32>
    %c1_92 = arith.constant 1 : index
    %c0_93 = arith.constant 0 : index
    %c0_94 = arith.constant 0 : index
    %137 = vector.load %arg9[%c1_92, %c0_93, %c0_94] : memref<2x32x32xbf16, #tpu.memory_space<vmem>>, vector<1x32x32xbf16>
    %138 = vector.shape_cast %137 : vector<1x32x32xbf16> to vector<32x32xbf16>
    %cst_95 = arith.constant dense<0.000000e+00> : vector<16x32xf32>
    %139 = tpu.matmul %129, %138, %cst_95 {dimension_numbers = #tpu.dot_dimension_numbers<[1], [0], [0], [1], [0, 0, 1, 1], [], []>} : vector<16x32xbf16>, vector<32x32xbf16>, vector<16x32xf32> -> vector<16x32xf32>
    %140 = vector.shape_cast %133 : vector<8x32xf32> to vector<8x2x16xf32>
    %141 = tpu.transpose %140, [1, 0, 2] : vector<8x2x16xf32> -> vector<2x8x16xf32>
    %142 = arith.truncf %141 : vector<2x8x16xf32> to vector<2x8x16xbf16>
    %143 = vector.shape_cast %136 : vector<16x32xf32> to vector<16x2x16xf32>
    %144 = tpu.transpose %143, [1, 0, 2] : vector<16x2x16xf32> -> vector<2x16x16xf32>
    %145 = arith.truncf %144 : vector<2x16x16xf32> to vector<2x16x16xbf16>
    %146 = vector.shape_cast %139 : vector<16x32xf32> to vector<16x2x16xf32>
    %147 = tpu.transpose %146, [1, 0, 2] : vector<16x2x16xf32> -> vector<2x16x16xf32>
    %148 = arith.truncf %147 : vector<2x16x16xf32> to vector<2x16x16xbf16>
    "tpu.trace_start"() <{level = 10 : i32, message = "hid,hjd->hij"}> : () -> ()
    %cst_96 = arith.constant dense<0.000000e+00> : vector<2x8x16xf32>
    %149 = tpu.matmul %142, %145, %cst_96 {dimension_numbers = #tpu.dot_dimension_numbers<[2], [2], [1], [1], [0, 0, 0, 1, 1, 1], [0], [0]>} : vector<2x8x16xbf16>, vector<2x16x16xbf16>, vector<2x8x16xf32> -> vector<2x8x16xf32>
    "tpu.trace_stop"() : () -> ()
    %cst_97 = arith.constant 2.500000e-01 : f32
    %150 = vector.broadcast %cst_97 : f32 to vector<2x8x16xf32>
    %151 = arith.mulf %149, %150 : vector<2x8x16xf32>
    %cst_98 = arith.constant dense<0xFF800000> : vector<2x8xf32>
    %152 = vector.multi_reduction <maximumf>, %151, %cst_98 [2] : vector<2x8x16xf32> to vector<2x8xf32>
    %153 = vector.shape_cast %152 : vector<2x8xf32> to vector<2x8x1xf32>
    %154 = vector.broadcast %153 : vector<2x8x1xf32> to vector<2x8x16xf32>
    %155 = arith.subf %151, %154 : vector<2x8x16xf32>
    %156 = math.exp %155 : vector<2x8x16xf32>
    %cst_99 = arith.constant dense<0.000000e+00> : vector<2x8xf32>
    %157 = vector.multi_reduction <add>, %156, %cst_99 [2] : vector<2x8x16xf32> to vector<2x8xf32>
    %158 = vector.shape_cast %157 : vector<2x8xf32> to vector<2x8x1xf32>
    %159 = vector.broadcast %158 : vector<2x8x1xf32> to vector<2x8x16xf32>
    %160 = arith.divf %156, %159 : vector<2x8x16xf32>
    %161 = arith.truncf %160 : vector<2x8x16xf32> to vector<2x8x16xbf16>
    "tpu.trace_start"() <{level = 10 : i32, message = "hij,hjd->hid"}> : () -> ()
    %cst_100 = arith.constant dense<0.000000e+00> : vector<2x8x16xf32>
    %162 = tpu.matmul %161, %148, %cst_100 {dimension_numbers = #tpu.dot_dimension_numbers<[2], [1], [1], [2], [0, 0, 0, 1, 1, 2], [0], [0]>} : vector<2x8x16xbf16>, vector<2x16x16xbf16>, vector<2x8x16xf32> -> vector<2x8x16xf32>
    "tpu.trace_stop"() : () -> ()
    %163 = tpu.transpose %162, [1, 0, 2] : vector<2x8x16xf32> -> vector<8x2x16xf32>
    %164 = vector.shape_cast %163 : vector<8x2x16xf32> to vector<8x32xf32>
    %165 = arith.truncf %164 : vector<8x32xf32> to vector<8x32xbf16>
    %c1_101 = arith.constant 1 : index
    %c0_102 = arith.constant 0 : index
    %c0_103 = arith.constant 0 : index
    %166 = vector.load %arg10[%c1_101, %c0_102, %c0_103] : memref<2x32x32xbf16, #tpu.memory_space<vmem>>, vector<1x32x32xbf16>
    %167 = vector.shape_cast %166 : vector<1x32x32xbf16> to vector<32x32xbf16>
    %cst_104 = arith.constant dense<0.000000e+00> : vector<8x32xf32>
    %168 = tpu.matmul %165, %167, %cst_104 {dimension_numbers = #tpu.dot_dimension_numbers<[1], [0], [0], [1], [0, 0, 1, 1], [], []>} : vector<8x32xbf16>, vector<32x32xbf16>, vector<8x32xf32> -> vector<8x32xf32>
    %c1_105 = arith.constant 1 : index
    %c0_106 = arith.constant 0 : index
    %c0_107 = arith.constant 0 : index
    %169 = vector.load %arg11[%c1_105, %c0_106, %c0_107] : memref<2x1x32xf32, #tpu.memory_space<vmem>>, vector<1x1x32xf32>
    %170 = vector.shape_cast %169 : vector<1x1x32xf32> to vector<1x32xf32>
    %171 = vector.broadcast %170 : vector<1x32xf32> to vector<8x32xf32>
    %172 = arith.addf %168, %171 : vector<8x32xf32>
    %173 = arith.truncf %172 : vector<8x32xf32> to vector<8x32xbf16>
    %c1_108 = arith.constant 1 : index
    %c0_109 = arith.constant 0 : index
    %c0_110 = arith.constant 0 : index
    %174 = vector.load %arg12[%c1_108, %c0_109, %c0_110] : memref<2x32x64xbf16, #tpu.memory_space<vmem>>, vector<1x32x64xbf16>
    %175 = vector.shape_cast %174 : vector<1x32x64xbf16> to vector<32x64xbf16>
    %cst_111 = arith.constant dense<0.000000e+00> : vector<8x64xf32>
    %176 = tpu.matmul %173, %175, %cst_111 {dimension_numbers = #tpu.dot_dimension_numbers<[1], [0], [0], [1], [0, 0, 1, 1], [], []>} : vector<8x32xbf16>, vector<32x64xbf16>, vector<8x64xf32> -> vector<8x64xf32>
    %c1_112 = arith.constant 1 : index
    %c0_113 = arith.constant 0 : index
    %c0_114 = arith.constant 0 : index
    %177 = vector.load %arg13[%c1_112, %c0_113, %c0_114] : memref<2x1x64xf32, #tpu.memory_space<vmem>>, vector<1x1x64xf32>
    %178 = vector.shape_cast %177 : vector<1x1x64xf32> to vector<1x64xf32>
    %179 = vector.broadcast %178 : vector<1x64xf32> to vector<8x64xf32>
    %180 = arith.addf %176, %179 : vector<8x64xf32>
    %181 = arith.addf %92, %180 : vector<8x64xf32>
    %182 = vector.shape_cast %181 : vector<8x64xf32> to vector<1x8x64xf32>
    %c0_115 = arith.constant 0 : index
    %c0_116 = arith.constant 0 : index
    %c0_117 = arith.constant 0 : index
    %183 = vector.load %arg14[%c0_115, %c0_116, %c0_117] : memref<1x8x64xf32, #tpu.memory_space<vmem>>, vector<1x8x64xf32>
    tpu.vector_store %arg14[%c0_115, %c0_116, %c0_117], %182 {strides = array<i32>} : memref<1x8x64xf32, #tpu.memory_space<vmem>>, vector<1x8x64xf32>,
    return
  }
  func.func @transform_0(%arg0: i32) -> (i32, i32, i32) {
    %c0_i32 = arith.constant 0 : i32
    %c0_i32_0 = arith.constant 0 : i32
    %c0_i32_1 = arith.constant 0 : i32
    return %arg0, %c0_i32, %c0_i32_0 : i32, i32, i32
  }
  func.func @transform_1(%arg0: i32) -> (i32, i32, i32) {
    %c0_i32 = arith.constant 0 : i32
    %c0_i32_0 = arith.constant 0 : i32
    %c0_i32_1 = arith.constant 0 : i32
    return %arg0, %c0_i32, %c0_i32_0 : i32, i32, i32
  }
  func.func @transform_2(%arg0: i32) -> (i32, i32, i32) {
    %c0_i32 = arith.constant 0 : i32
    %c0_i32_0 = arith.constant 0 : i32
    %c0_i32_1 = arith.constant 0 : i32
    %c0_i32_2 = arith.constant 0 : i32
    return %c0_i32, %c0_i32_0, %c0_i32_1 : i32, i32, i32
  }
  func.func @transform_3(%arg0: i32) -> (i32, i32, i32) {
    %c0_i32 = arith.constant 0 : i32
    %c0_i32_0 = arith.constant 0 : i32
    %c0_i32_1 = arith.constant 0 : i32
    %c0_i32_2 = arith.constant 0 : i32
    return %c0_i32, %c0_i32_0, %c0_i32_1 : i32, i32, i32
  }
  func.func @transform_4(%arg0: i32) -> (i32, i32, i32) {
    %c0_i32 = arith.constant 0 : i32
    %c0_i32_0 = arith.constant 0 : i32
    %c0_i32_1 = arith.constant 0 : i32
    %c0_i32_2 = arith.constant 0 : i32
    return %c0_i32, %c0_i32_0, %c0_i32_1 : i32, i32, i32
  }
  func.func @transform_5(%arg0: i32) -> (i32, i32, i32) {
    %c0_i32 = arith.constant 0 : i32
    %c0_i32_0 = arith.constant 0 : i32
    %c0_i32_1 = arith.constant 0 : i32
    %c0_i32_2 = arith.constant 0 : i32
    return %c0_i32, %c0_i32_0, %c0_i32_1 : i32, i32, i32
  }
  func.func @transform_6(%arg0: i32) -> (i32, i32, i32) {
    %c0_i32 = arith.constant 0 : i32
    %c0_i32_0 = arith.constant 0 : i32
    %c0_i32_1 = arith.constant 0 : i32
    %c0_i32_2 = arith.constant 0 : i32
    return %c0_i32, %c0_i32_0, %c0_i32_1 : i32, i32, i32
  }
  func.func @transform_7(%arg0: i32) -> (i32, i32, i32) {
    %c0_i32 = arith.constant 0 : i32
    %c0_i32_0 = arith.constant 0 : i32
    %c0_i32_1 = arith.constant 0 : i32
    %c0_i32_2 = arith.constant 0 : i32
    return %c0_i32, %c0_i32_0, %c0_i32_1 : i32, i32, i32
  }
  func.func @transform_8(%arg0: i32) -> (i32, i32, i32) {
    %c0_i32 = arith.constant 0 : i32
    %c0_i32_0 = arith.constant 0 : i32
    %c0_i32_1 = arith.constant 0 : i32
    %c0_i32_2 = arith.constant 0 : i32
    return %c0_i32, %c0_i32_0, %c0_i32_1 : i32, i32, i32
  }
  func.func @transform_9(%arg0: i32) -> (i32, i32, i32) {
    %c0_i32 = arith.constant 0 : i32
    %c0_i32_0 = arith.constant 0 : i32
    %c0_i32_1 = arith.constant 0 : i32
    %c0_i32_2 = arith.constant 0 : i32
    return %c0_i32, %c0_i32_0, %c0_i32_1 : i32, i32, i32
  }
  func.func @transform_10(%arg0: i32) -> (i32, i32, i32) {
    %c0_i32 = arith.constant 0 : i32
    %c0_i32_0 = arith.constant 0 : i32
    %c0_i32_1 = arith.constant 0 : i32
    %c0_i32_2 = arith.constant 0 : i32
    return %c0_i32, %c0_i32_0, %c0_i32_1 : i32, i32, i32
  }
  func.func @transform_11(%arg0: i32) -> (i32, i32, i32) {
    %c0_i32 = arith.constant 0 : i32
    %c0_i32_0 = arith.constant 0 : i32
    %c0_i32_1 = arith.constant 0 : i32
    %c0_i32_2 = arith.constant 0 : i32
    return %c0_i32, %c0_i32_0, %c0_i32_1 : i32, i32, i32
  }
  func.func @transform_12(%arg0: i32) -> (i32, i32, i32) {
    %c0_i32 = arith.constant 0 : i32
    %c0_i32_0 = arith.constant 0 : i32
    %c0_i32_1 = arith.constant 0 : i32
    %c0_i32_2 = arith.constant 0 : i32
    return %c0_i32, %c0_i32_0, %c0_i32_1 : i32, i32, i32
  }
  func.func @transform_13(%arg0: i32) -> (i32, i32, i32) {
    %c0_i32 = arith.constant 0 : i32
    %c0_i32_0 = arith.constant 0 : i32
    %c0_i32_1 = arith.constant 0 : i32
    return %arg0, %c0_i32, %c0_i32_0 : i32, i32, i32
  }
}

</mosaic_0001>

<bundles_post_ra>
// kernel: tpu_custom_call.1
= control target key start
LH: loop header
LB: loop body
LE: loop exit
PB: predicated region body
PF: predicated region fallthrough
CT: control target
= control target key end

     0   :  { %s4818_s0 = inlined_call_operand.hbm [shape: f32[2,8,64], index: 0, kind: input, shape index: {}]   ;;  %s4819_s1 = inlined_call_operand.hbm [shape: f32[2,8,32], index: 1, kind: input, shape index: {}]   ;;  %s4820_s2 = inlined_call_operand.vmem [shape: bf16[2,64,32], index: 2, kind: input, shape index: {}]   ;;  %s4821_s3 = inlined_call_operand.vmem [shape: f32[2,1,32], index: 3, kind: input, shape index: {}]   ;;  %s4822_s4 = inlined_call_operand.vmem [shape: f32[2,1,32], index: 4, kind: input, shape index: {}]   ;;  %s4823_s5 = inlined_call_operand.vmem [shape: f32[2,1,32], index: 5, kind: input, shape index: {}]   ;;  %s4824_s6 = inlined_call_operand.vmem [shape: bf16[2,32,32], index: 6, kind: input, shape index: {}]   ;;  %s4825_s7 = inlined_call_operand.vmem [shape: bf16[2,32,32], index: 7, kind: input, shape index: {}]   ;;  %s4826_s8 = inlined_call_operand.vmem [shape: bf16[2,32,32], index: 8, kind: input, shape index: {}]   ;;  %s4827_s9 = inlined_call_operand.hbm [shape: bf16[2,32,32], index: 9, kind: input, shape index: {}]   ;;  %s4828_s10 = inlined_call_operand.vmem [shape: f32[2,1,32], index: 10, kind: input, shape index: {}]   ;;  %s4829_s11 = inlined_call_operand.hbm [shape: bf16[2,32,64], index: 11, kind: input, shape index: {}]   ;;  %s4830_s12 = inlined_call_operand.vmem [shape: f32[2,1,64], index: 12, kind: input, shape index: {}]   ;;  %s4831_s13 = inlined_call_operand.hbm [shape: f32[2,8,64], index: 13, kind: output, shape index: {}]  }
   0x1   :  { %4845 = sst [smem:[#allocation23_spill]] %s4827_s9 }
   0x2   :  { %4846 = sst [smem:[#allocation24_spill]] %s4829_s11 }
   0x3   :  { %4847 = sst [smem:[#allocation25_spill]] %s4830_s12 }
   0x4   :  { %4848 = sst [smem:[#allocation26_spill]] %s4831_s13 }
   0x5   :  { %18 = vsyncpa [#allocation4], 0 }
   0x6   :  { %20 = vsyncpa [#allocation4 + $0x1], 0 }
   0x7   :  { %21 = vsyncpa [#allocation7], 0 }
   0x8   :  { %23 = vsyncpa [#allocation7 + $0x1], 0 }
   0x9   :  { %24 = vsyncpa [#allocation10], 0 }
   0xa   :  { %25 = vsyncpa [#allocation5], 0 }
   0xb   :  { %27 = vsyncpa [#allocation5 + $0x1], 0  ;;  %s4117_s25 = smov 0   ;;  %s4119_s26 = smov 0  }
   0xc   :  { %s4121_s27 = smov 0   ;;  %s4123_s28 = smov 0  }
   0xd LB: > { %4849 = sst [smem:[#allocation17_spill]] %s4020_s25  ;;  %s4138_s29 = sadd.s32 4294967295, %s4032_s28   ;;  %s4032_s28 = sphi %s4123_s28, %s4878_s28   ;;  %s4028_s27 = sphi %s4121_s27, %s4880_s27   ;;  %s4024_s26 = sphi %s4119_s26, %s4882_s26   ;;  %s4020_s25 = sphi %s4117_s25, %s4881_s25  }
   0xe   : > { %4850 = sst [smem:[#allocation18_spill]] %s4028_s27  ;;  %s3386_s30 = sadd.s32 4294967294, %s4032_s28  }
   0xf   : > { %p53_p0 = scmp.ne.s32.totalorder %s4024_s26, %s4020_s25  ;;  %p4832_p1 = scmp.eq.s32.totalorder %s4138_s29, 0 }
  0x10   : > { %p340_p3 = scmp.eq.s32.totalorder %s3386_s30, 1  ;;  %p3387_p5 = scmp.ge.s32.totalorder %s4032_s28, 1 }
  0x11   : > { %p4147_p4 = por %p4832_p1, %p53_p0  ;;  %p347_p7 = scmp.lt.s32.totalorder %s4032_s28, 3 }
  0x12   : > { %p4152_p6 = por %p340_p3, %p53_p0  ;;  %s4034_s17 = smov [#allocation8]  }
  0x13   : > { %s4851_s14 = scalar_select %p4147_p4, 1, 0 }
  0x14   : > { %s4852_s15 = scalar_select %p4152_p6, 1, 0 }
  0x15   : > { %p4157_p8 = pnand %p3387_p5, %p347_p7  ;;  %s380_s18 = sshll.u32 %s4034_s17, 4  ;;  %s381_s18 = int_to_ptr.vmem [resolvable:$true] %s380_s18 }
  0x16   : > { %4853 = sst [smem:[#allocation19_spill]] %s4852_s15  ;;  %s4035_s20 = smov [#allocation9]  }
  0x17   : > { %s4854_s16 = scalar_select %p4157_p8, 1, 0 }
  0x18   : > { %p3734_p9 = pneg %p4157_p8  ;;  %s396_s21 = sshll.u32 %s4035_s20, 4  ;;  %s397_s21 = int_to_ptr.vmem [resolvable:$true] %s396_s21 }
  0x19   : > { %s3859_s22 = scalar_lea.vmem %s381_s18, 512  ;;  %p3867_p5 = scmp.lt.s32.totalorder %s381_s18, %s381_s18 }
  0x1a   : > { %p4166_p11 = pnand %p3734_p9, %p4832_p1  ;;  %p3860_p13 = scmp.ne.s32.totalorder %s381_s18, %s3859_s22 }
  0x1b   : > { %p3868_p7 = scmp.lt.s32.totalorder %s3859_s22, %s3859_s22 }
  0x1c   : > { %p3850_p12 = pneg %p4166_p11 }
  0x1d   : > { %p3869_p10 = por %p3868_p7, %p3867_p5 }
  0x1e   : > { %p3862_p0 = pnand %p3860_p13, %p3850_p12 }
  0x20   : > { %p3863_p3 = pneg %p3862_p0 }
  0x22   : > { %p3870_p9 = pnand %p3869_p10, %p3863_p3 }
  0x24   : > { %3873 = shalt.err (!%p3870_p9)
}
  0x25   : > { %s4036_s23 = smov 64   ;;  %s4037_s24 = smov 4  }
  0x26   : > { %s4856_s9 = sld [smem:[#allocation23_spill]]  ;;  %s3885_s20 = scalar_lea.vmem %s397_s21, 512 }
  0x27   : > { %p3886_p1 = scmp.ne.s32.totalorder %s397_s21, %s3885_s20  ;;  %p3893_p2 = scmp.lt.s32.totalorder %s397_s21, %s397_s21 }
  0x28   : > { %p3894_p6 = scmp.lt.s32.totalorder %s3885_s20, %s3885_s20 }
  0x29   : > { %p3888_p13 = pnand %p3886_p1, %p3850_p12 }
  0x2a   : > { %p3895_p5 = por %p3894_p6, %p3893_p2 }
  0x2b   : > { %p3889_p0 = pneg %p3888_p13 }
  0x2c   : > { %3737 = dma.hbm_to_vmem [thread:$0]  (!%p4166_p11), %s4856_s9, 512, %s381_s18, [#allocation7], %s4036_s23, %s4036_s23, %s4037_s24  }
  0x2d   : > { %p3896_p10 = pnand %p3895_p5, %p3889_p0 }
  0x2f   : > { %3899 = shalt.err (!%p3896_p10)
}
  0x30   : > { %s4857_s11 = sld [smem:[#allocation24_spill]]  ;;  %s4189_s18 = sadd.s32 1, %s4032_s28  }
  0x31   : > { %4858 = sst [smem:[#allocation20_spill]] %s4189_s18  ;;  %s40_s30 = sadd.s32 1, %s4028_s27 }
  0x32   : > { %s37_s19 = ssub.s32 %s4032_s28, %s4189_s18  ;;  %p47_p1 = scmp.ne.s32.totalorder %s4028_s27, %s4024_s26 }
  0x33   : > { %p38_p2 = scmp.eq.s32.totalorder %s37_s19, 0  ;;  %p48_p6 = scmp.eq.s32.totalorder %s4032_s28, 0 }
  0x34   : > { %p4859_p12 = scmp.eq.s32.totalorder %s4138_s29, 1  ;;  %p3754_p7 = scmp.lt.s32.totalorder %s4032_s28, 2 }
  0x35   : > { %s4205_s17 = scalar_select %p38_p2, %s4028_s27, %s40_s30  }
  0x36   : > { %3740 = dma.hbm_to_vmem [thread:$0]  (!%p4166_p11), %s4857_s11, 512, %s397_s21, [#allocation10], %s4036_s23, %s4036_s23, %s4037_s24  }
  0x37   : > { %p4199_p3 = por %p4859_p12, %p47_p1  ;;  %4862 = sst [smem:[#allocation22_spill]] %s4205_s17 }
  0x38   : > { %p49_p9 = por %p48_p6, %p47_p1  ;;  %s413_s20 = sand.u32 1, %s4028_s27  }
  0x39   : > { %s4860_s15 = scalar_select %p4199_p3, 1, 0 }
  0x3a   : > { %s4208_s21 = sshll.u32 %s413_s20, 3  ;;  %s3392_s23 = sshll.u32 %s4032_s28, 7 }
  0x3b   : > { %4861 = sst [smem:[#allocation21_spill]] %s4860_s15  ;;  %s4214_s9 = scalar_lea.hbm %s4818_s0, %s3392_s23 }
  0x3c   : > { %s417_s19 = scalar_lea.vmem [#allocation3], %s4208_s21  ;;  %p4219_p11 = pnand %p3754_p7, %p49_p9 }
  0x3d   : > { %s424_s11 = sshll.u32 %s417_s19, 4  ;;  %s4226_s18 = scalar_lea.hbm %s4819_s1, %s3392_s23  ;;  %s4217_s11 = int_to_ptr.vmem [resolvable:$true] %s424_s11 }
  0x3e   : > { %s431_s24 = sand.u32 1, %s4032_s28   ;;  %s414_s22 = scalar_lea.sflag [#allocation4], %s413_s20 }
  0x3f   : > { %s3900_s25 = scalar_lea.hbm %s4214_s9, 128  ;;  %p3902_p0 = pneg %p4219_p11 }
  0x40   : > { %p3901_p13 = scmp.ne.s32.totalorder %s4214_s9, %s3900_s25  ;;  %s3905_s15 = scalar_lea.hbm %s4818_s0, 256 }
  0x41   : > { %p3906_p1 = scmp.lt.s32.totalorder %s4214_s9, %s4818_s0  ;;  %p3907_p2 = scmp.lt.s32.totalorder %s3905_s15, %s3900_s25 }
  0x42   : > { %p3903_p5 = pnand %p3902_p0, %p3901_p13 }
  0x43   : > { %p3908_p6 = por %p3907_p2, %p3906_p1 }
  0x44   : > { %p3904_p10 = pneg %p3903_p5 }
  0x46   : > { %p3909_p12 = pnand %p3908_p6, %p3904_p10 }
  0x48   : > { %3912 = shalt.err (!%p3909_p12)
}
  0x49   : > { %s3913_s17 = scalar_lea.vmem %s4217_s11, 128  ;;  %s4038_s13 = smov [#allocation3]  }
  0x4a   : > { %p3914_p7 = scmp.ne.s32.totalorder %s4217_s11, %s3913_s17  ;;  %s3918_s20 = sshll.u32 %s4038_s13, 4  ;;  %s3919_s20 = int_to_ptr.vmem [resolvable:$false] %s3918_s20 }
  0x4b   : > { %s3920_s23 = scalar_lea.vmem %s3919_s20, 256  ;;  %p3921_p5 = scmp.lt.s32.totalorder %s4217_s11, %s3919_s20 }
  0x4c   : > { %p3916_p9 = pnand %p3914_p7, %p3902_p0  ;;  %p3922_p3 = scmp.lt.s32.totalorder %s3920_s23, %s3913_s17 }
  0x4e   : > { %p3917_p13 = pneg %p3916_p9  ;;  %p3923_p4 = por %p3922_p3, %p3921_p5 }
  0x50   : > { %p3924_p1 = pnand %p3923_p4, %p3917_p13 }
  0x52   : > { %3927 = shalt.err (!%p3924_p1)
}
  0x53   : > { %3744 = dma.hbm_to_vmem [thread:$0]  (!%p4219_p11), %s4214_s9, 128, %s4217_s11, %s414_s22  }
  0x54   : > { %s435_s12 = scalar_lea.vmem [#allocation6], %s4208_s21  ;;  %s432_s15 = scalar_lea.sflag [#allocation7], %s431_s24 }
  0x55   : > { %s442_s25 = sshll.u32 %s435_s12, 4  ;;  %s3928_s19 = scalar_lea.hbm %s4226_s18, 128  ;;  %s443_s25 = int_to_ptr.vmem [resolvable:$true] %s442_s25 }
  0x56   : > { %p3929_p3 = scmp.ne.s32.totalorder %s4226_s18, %s3928_s19  ;;  %s3933_s13 = scalar_lea.hbm %s4819_s1, 256 }
  0x57   : > { %p3934_p2 = scmp.lt.s32.totalorder %s4226_s18, %s4819_s1  ;;  %p3935_p6 = scmp.lt.s32.totalorder %s3933_s13, %s3928_s19 }
  0x58   : > { %p3931_p4 = pnand %p3929_p3, %p3902_p0 }
  0x59   : > { %p3936_p12 = por %p3935_p6, %p3934_p2 }
  0x5a   : > { %p3932_p10 = pneg %p3931_p4 }
  0x5c   : > { %p3937_p7 = pnand %p3936_p12, %p3932_p10 }
  0x5e   : > { %3940 = shalt.err (!%p3937_p7)
}
  0x5f   : > { %s3941_s9 = scalar_lea.vmem %s443_s25, 128  ;;  %s4039_s11 = smov [#allocation6]  }
  0x60   : > { %p3942_p9 = scmp.ne.s32.totalorder %s443_s25, %s3941_s9  ;;  %s3946_s21 = sshll.u32 %s4039_s11, 4  ;;  %s3947_s21 = int_to_ptr.vmem [resolvable:$false] %s3946_s21 }
  0x61   : > { %s3948_s24 = scalar_lea.vmem %s3947_s21, 256  ;;  %p3949_p1 = scmp.lt.s32.totalorder %s443_s25, %s3947_s21 }
  0x62   : > { %p3944_p13 = pnand %p3942_p9, %p3902_p0  ;;  %p3950_p3 = scmp.lt.s32.totalorder %s3948_s24, %s3941_s9 }
  0x64   : > { %p3945_p5 = pneg %p3944_p13  ;;  %p3951_p4 = por %p3950_p3, %p3949_p1 }
  0x66   : > { %p3952_p8 = pnand %p3951_p4, %p3945_p5 }
  0x68   : > { %3955 = shalt.err (!%p3952_p8)
}
  0x69   : > { %3747 = dma.hbm_to_vmem [thread:$0]  (!%p4219_p11), %s4226_s18, 128, %s443_s25, %s432_s15  }
  0x6a   : > { %p4864_p10 = scmp.ne.s32.totalorder %s4854_s16, 0 }
  0x6b   : > { %s4277_s22 = sand.u32 (!%p4864_p10), 1, %s4024_s26   ;;  %p4865_p0 = scmp.ne.s32.totalorder (!%p4864_p10), %s4851_s14, 0 }
  0x6c   : > { %451 = sbr.rel (%p4864_p10) target bundleno = 4352 (0x1100), region = 72  ;;  %s4280_s12 = sshll.u32 (!%p4864_p10), %s4277_s22, 3 }
  0x6d   : > { %s454_s19 = scalar_lea.sflag (!%p4864_p10), [#allocation4], %s4277_s22  ;;  %s457_s27 = scalar_lea.vmem (!%p4864_p10), [#allocation3], %s4280_s12 }
  0x71   : > { %3999 = dma.done.wait (%p4865_p0), %s454_s19, 128  }
  0x72   : > { %4001 = vsyncadd (%p4865_p0), %s454_s19, 4294967168  ;;  %s462_s16 = sand.u32 1, %s4138_s29   ;;  %s466_s30 = scalar_lea.vmem [#allocation6], %s4280_s12 }
  0x73   : > { %s463_s18 = scalar_lea.sflag [#allocation7], %s462_s16 }
  0x74   : > { %4003 = dma.done.wait (%p4865_p0), %s463_s18, 128  }
  0x75   : > { %4005 = vsyncadd (%p4865_p0), %s463_s18, 4294967168  ;;  %p4866_p8 = scmp.eq.s32.totalorder %s4138_s29, 0 }
  0x77   : > { %4007 = dma.done.wait (%p4866_p8), [#allocation7], 512   ;;  %p4867_p11 = pmov %p4866_p8 }
  0x78   : > { %p4868_p2 = pmov %p4866_p8 }
  0x79   : > { %4009 = vsyncadd (%p4867_p11), [#allocation7], 4294966784 }
  0x7a   : > { %4011 = dma.done.wait (%p4868_p2), [#allocation10], 512   ;;  %p4869_p6 = pmov %p4868_p2 }
  0x7b   : > { %v4040_v0 = vmov 0.0   ;;  %vm4041_vm0 = vmmov 0   ;;  %v3800_v1 = vld [vmem:[%s4820_s2 + $0x18] sm:$0xff]   ;;  %v3801_v2 = vld [vmem:[%s4820_s2 + $0x10] sm:$0xff]   ;;  %v3802_v3 = vld [vmem:[%s4820_s2 + $0x8] sm:$0xff]   ;;  %vm567_vm1 = vcmask 523264   ;;  %v830_v53 = vlaneseq }
  0x7c   : > { %4013 = vsyncadd (%p4869_p6), [#allocation10], 4294966784  ;;  %3568 = vmatprep.subr.bf16.mxu0 %v4040_v0  ;;  %3576 = vmatprep.mubr.msk.bf16.mxu0 %vm4041_vm0, %v4040_v0  ;;  %v3803_v4 = vld [vmem:[%s4820_s2] sm:$0xff]   ;;  %v4322_v5 = vld [vmem:[%s457_s27] sm:$0xff]  ;;  %vm524_vm2 = vcmask 261120   ;;  %s4042_s24 = smov 112  }
  0x7d   : > { %3580 = vmatprep.subr.bf16.mxu1 %v4040_v0  ;;  %3584 = vmatprep.mubr.msk.bf16.mxu1 %vm4041_vm0, %v4040_v0  ;;  %v527_v6 = vpack.c.bf16 %v4322_v5, %v4322_v5  ;;  %v3401_v7 = vld [vmem:[%s4821_s3] ss:$0 sm:$0xff]  ;;  %v3804_v19 = vld [vmem:[%s4824_s6 + $0x8] sm:$0xff]   ;;  %v4043_v51 = vmov 1983009808   ;;  %v831_v55 = vshrl.u32 %v830_v53, 7 }
  0x7e   : > { %3569 = vmatpush3.bf16.msra.mxu0 %v3800_v1  ;;  %3581 = vmatpush3.bf16.msra.mxu1 %v3804_v19  ;;  %v3805_v20 = vld [vmem:[%s4824_s6] sm:$0xff]   ;;  %v3807_v22 = vld [vmem:[%s4826_s8 + $0x8] sm:$0xff]   ;;  %v828_v52 = vunpack.c.l.s4 %v4043_v51  ;;  %v4044_v57 = vmov 1934713408   ;;  %vm1428_vm3 = vcmask 130048   ;;  %s4045_s19 = smov 16  }
  0x7f   : > { %3570 = vmatprep.subr.bf16.mxu0 %v4040_v0  ;;  %3582 = vmatprep.subr.bf16.mxu1 %v4040_v0  ;;  %v523_v21 = vld [vmem:[%s466_s30] sm:$0xff]  ;;  %v859_v58 = vunpack.c.l.s4 %v4044_v57  ;;  %s4870_s11 = sld [smem:[#allocation25_spill]]  ;;  %s3509_s17 = sshll.u32 %s4138_s29, 7 }
  0x80   : > { %525 = vst.msk [vmem:[#allocation2 + $0x8] sm:$0xff] %vm524_vm2, %v523_v21  ;;  %v3809_v23 = vld [vmem:[%s4826_s8] sm:$0xff]   ;;  %v3806_v33 = vld [vmem:[%s4825_s7 + $0x8] sm:$0xff]   ;;  %v829_v54 = vunpack.c.0.s8 %v828_v52  ;;  %s4871_s30 = sld [smem:[#allocation21_spill]]  ;;  %s521_s13 = scalar_lea.vmem [#allocation11], %s4280_s12 }
  0x81   : > { %v3407_v28 = vld [vmem:[%s4822_s4] ss:$0 sm:$0xff]  ;;  %v860_v63 = vunpack.c.0.s8 %v859_v58  ;;  %s3274_s20 = sshll.u32 %s521_s13, 4  ;;  %s4872_s21 = sld [smem:[#allocation26_spill]]  ;;  %s4776_s20 = int_to_ptr.vmem [resolvable:$true] %s3274_s20 }
  0x82   : > { %3571 = vmatpush3.bf16.msra.mxu0 %v3801_v2  ;;  %3583 = vmatpush3.bf16.msra.mxu1 %v3805_v20  ;;  %v3408_v30 = vld [vmem:[%s4823_s5] ss:$0 sm:$0xff]  ;;  %v4390_v60 = vsub.s32 %v829_v54, %v831_v55  ;;  %s3261_s29 = scalar_lea.sflag [#allocation5], %s4277_s22  ;;  %s3956_s12 = scalar_lea.vmem %s4776_s20, 128 }
  0x83   : > { %3572 = vmatprep.subr.bf16.mxu0 %v4040_v0  ;;  %3588 = vmatprep.subr.bf16.mxu1 %v4040_v0  ;;  %v3808_v35 = vld [vmem:[%s4825_s7] sm:$0xff]   ;;  %p3957_p12 = scmp.ne.s32.totalorder %s4776_s20, %s3956_s12  ;;  %s4046_s16 = smov [#allocation11]  }
  0x84   : > { %s3960_s18 = sshll.u32 %s4046_s16, 4  ;;  %s3961_s18 = int_to_ptr.vmem [resolvable:$false] %s3960_s18 }
  0x85   : > { %s3962_s14 = scalar_lea.vmem %s3961_s18, 256  ;;  %p3963_p5 = scmp.lt.s32.totalorder %s4776_s20, %s3961_s18 }
  0x86   : > { %3573 = vmatpush3.bf16.msra.mxu0 %v3802_v3  ;;  %p4873_p7 = scmp.ne.s32.totalorder %s4871_s30, 0  ;;  %p3964_p1 = scmp.lt.s32.totalorder %s3962_s14, %s3956_s12 }
  0x87   : > { %3574 = vmatprep.subr.bf16.mxu0 %v4040_v0  ;;  %v4372_v36 = vld [vmem:[#allocation2 + $0x8] sm:$0xff]  ;;  %s4774_s27 = scalar_lea.hbm %s4872_s21, %s3509_s17 }
  0x88   : > { %p3958_p9 = pnand %p3957_p12, %p4873_p7  ;;  %p3965_p3 = por %p3964_p1, %p3963_p5 }
  0x8a   : > { %3575 = vmatpush3.bf16.msra.mxu0 %v3803_v4  ;;  %p3959_p13 = pneg %p3958_p9 }
  0x8b   : > { %3596 = vmatprep.subr.bf16.mxu0 %v4040_v0 }
  0x8c   : > { %p3966_p4 = pnand %p3965_p3, %p3959_p13 }
  0x8d   : > { %3577 = vmatmul.mubr.msk.bf16.vlgmr.msra.gmra.mxu0 %vm567_vm1, %v527_v6 }
  0x8e   : > { %3600 = vmatprep.mubr.msk.bf16.mxu0 %vm4041_vm0, %v4040_v0  ;;  %3597 = vmatpush3.bf16.msra.mxu0 %v3807_v22 }
  0x8f   : > { %3598 = vmatprep.subr.bf16.mxu0 %v4040_v0 }
  0x92   : > { %3599 = vmatpush3.bf16.msra.mxu0 %v3809_v23 }
  0x93   : > { %3610 = vmatprep.subr.bf16.mxu0 %v4040_v0 }
 0x14d   : > { %v605_v8 = vpop.f32.mrf.mxu0 }
 0x14e   : > { %v606_v9 = vadd.f32 %v3401_v7, %v605_v8 }
 0x14f   : > { %v3578_v10 = vpop.f32.mrf.mxu0 }
 0x150   : > { %v611_v11 = vsel %vm524_vm2, %v606_v9, 0.0 }
 0x151   : > { %612 = vadd.xlane.f32.xlu0 %v611_v11  ;;  %v608_v12 = vpop.f32.mrf.mxu0 }
 0x153   : > { %v3579_v13 = vpop.f32.mrf.mxu0 }
 0x1da   : > { %v613_v14 = vpop.xlane.xlu0 %612 }
 0x1db   : > { %v615_v15 = vmul.f32 0.03125, %v613_v14 }
 0x1dd   : > { %v616_v16 = vsub.f32 %v606_v9, %v615_v15  ;;  %v4399_v9 = vsub.s32 %v860_v63, %v831_v55 }
 0x1df   : > { %v617_v17 = vmul.f32 %v616_v16, %v616_v16 }
 0x1e1   : > { %v618_v18 = vsel %vm524_vm2, %v617_v17, 0.0 }
 0x1e2   : > { %619 = vadd.xlane.f32.xlu0 %v618_v18 }
 0x26b   : > { %v620_v24 = vpop.xlane.xlu0 %619 }
 0x26c   : > { %v621_v25 = vmul.f32 0.03125, %v620_v24 }
 0x26e   : > { %v622_v26 = vadd.f32 1e-05, %v621_v25 }
 0x270   : > { %3828 = vrsqrt.f32 %v622_v26 }
 0x27d   : > { %v3829_v27 = vpop.eup %3828 }
 0x27e   : > { %v624_v29 = vmul.f32 %v3829_v27, %v616_v16 }
 0x280   : > { %v632_v31 = vmul.f32 %v3407_v28, %v624_v29 }
 0x282   : > { %v640_v32 = vadd.f32 %v3408_v30, %v632_v31 }
 0x284   : > { %641 = vst.msk [vmem:[#allocation2] sm:$0xff] %vm524_vm2, %v640_v32  ;;  %v645_v34 = vpack.c.bf16 %v640_v32, %v640_v32 }
 0x286   : > { %3585 = vmatmul.mubr.msk.bf16.vlgmr.msra.gmra.mxu1 %vm524_vm2, %v645_v34 }
 0x287   : > { %3589 = vmatpush3.bf16.msra.mxu1 %v3806_v33  ;;  %3592 = vmatprep.mubr.msk.bf16.mxu1 %vm4041_vm0, %v4040_v0 }
 0x288   : > { %3590 = vmatprep.subr.bf16.mxu1 %v4040_v0 }
 0x28b   : > { %3591 = vmatpush3.bf16.msra.mxu1 %v3808_v35  ;;  %v642_v37 = vld [vmem:[#allocation2] sm:$0xff] }
 0x28c   : > { %v644_v38 = vpack.c.bf16 %v4372_v36, %v642_v37  ;;  %3604 = vmatprep.subr.bf16.mxu1 %v4040_v0 }
 0x28e   : > { %3593 = vmatmul.mubr.msk.bf16.vlgmr.msra.gmra.mxu1 %vm524_vm2, %v644_v38  ;;  %3601 = vmatmul.mubr.msk.bf16.vlgmr.msra.gmra.mxu0 %vm524_vm2, %v644_v38 }
 0x28f   : > { %3606 = vmatprep.mubr.msk.bf16.mxu1 %vm4041_vm0, %v4040_v0  ;;  %3612 = vmatprep.mubr.msk.bf16.mxu0 %vm4041_vm0, %v4040_v0 }
 0x346   : > { %v699_v39 = vpop.f32.mrf.mxu1 }
 0x347   : > { %823 = vrot.lane.b32.xlu0 %v699_v39, %s4042_s24  ;;  %v826_v56 = vcombine.high %v699_v39, %v4040_v0  ;;  %v833_v6 = vrot.slane %v699_v39, %v4390_v60 }
 0x348   : > { %v3586_v40 = vpop.f32.mrf.mxu1 }
 0x349   : > { %v840_v62 = vrot.slane %v826_v56, %v4390_v60 }
 0x34a   : > { %v702_v41 = vpop.f32.mrf.mxu1 }
 0x34c   : > { %v3587_v42 = vpop.f32.mrf.mxu1 }
 0x34e   : > { %v758_v43 = vpop.f32.mrf.mxu1  ;;  %v4383_v44 = vpop.f32.mrf.mxu0 }
 0x34f   : > { %946 = vrot.lane.b32.xlu1 %v758_v43, %s4042_s24  ;;  %v952_v7 = vcombine.high %v758_v43, %v4040_v0  ;;  %v959_v15 = vrot.slane %v758_v43, %v4390_v60 }
 0x350   : > { %v3594_v45 = vpop.f32.mrf.mxu1  ;;  %v3602_v46 = vpop.f32.mrf.mxu0 }
 0x351   : > { %v966_v18 = vrot.slane %v952_v7, %v4390_v60 }
 0x352   : > { %v761_v47 = vpop.f32.mrf.mxu1  ;;  %v4386_v48 = vpop.f32.mrf.mxu0 }
 0x353   : > { %948 = vrot.lane.b32.xlu1 %v761_v47, %s4042_s24  ;;  %v1018_v8 = vcombine.high %v761_v47, %v4040_v0  ;;  %v1025_v19 = vrot.slane %v761_v47, %v4390_v60 }
 0x354   : > { %v3595_v49 = vpop.f32.mrf.mxu1  ;;  %v3603_v50 = vpop.f32.mrf.mxu0 }
 0x355   : > { %v1032_v20 = vrot.slane %v1018_v8, %v4390_v60 }
 0x3b9   : > { %v824_v59 = vpop.permute.xlu0 %823 }
 0x3ba   : > { %v841_v61 = vcombine.high %v824_v59, %v4040_v0  ;;  %v848_v2 = vrot.slane %v824_v59, %v4390_v60 }
 0x3bc   : > { %v855_v1 = vrot.slane %v841_v61, %v4390_v60  ;;  %v856_v10 = vcombine.low %v833_v6, %v848_v2  ;;  %v857_v12 = vcombine.high %v833_v6, %v848_v2 }
 0x3be   : > { %v872_v3 = vcombine.low %v840_v62, %v855_v1  ;;  %v873_v4 = vcombine.high %v840_v62, %v855_v1  ;;  %v864_v21 = vrot.slane %v856_v10, %v4399_v9  ;;  %v871_v26 = vrot.slane %v857_v12, %v4399_v9 }
 0x3c0   : > { %v880_v13 = vrot.slane %v872_v3, %v4399_v9  ;;  %v887_v14 = vrot.slane %v873_v4, %v4399_v9  ;;  %v892_v57 = vcombine.low %v864_v21, %v871_v26  ;;  %v3418_v58 = vcombine.high %v864_v21, %v871_v26 }
 0x3c1   : > { %v947_v11 = vpop.permute.xlu1 %946 }
 0x3c2   : > { %v967_v16 = vcombine.high %v947_v11, %v4040_v0  ;;  %v974_v17 = vrot.slane %v947_v11, %v4390_v60  ;;  %v908_v27 = vcombine.low %v880_v13, %v887_v14  ;;  %v3419_v34 = vcombine.high %v880_v13, %v887_v14 }
 0x3c3   : > { %v899_v12 = vrot.slane %v892_v57, %v4390_v60  ;;  %v907_v13 = vrot.slane %v3418_v58, %v4390_v60 }
 0x3c4   : > { %v981_v22 = vrot.slane %v967_v16, %v4390_v60  ;;  %v982_v23 = vcombine.low %v959_v15, %v974_v17  ;;  %v983_v24 = vcombine.high %v959_v15, %v974_v17  ;;  %v915_v3 = vrot.slane %v908_v27, %v4390_v60 }
 0x3c5   : > { %v949_v25 = vpop.permute.xlu1 %948  ;;  %v923_v4 = vrot.slane %v3419_v34, %v4390_v60 }
 0x3c6   : > { %v1033_v28 = vcombine.high %v949_v25, %v4040_v0  ;;  %v1040_v29 = vrot.slane %v949_v25, %v4390_v60  ;;  %v990_v30 = vrot.slane %v982_v23, %v4399_v9  ;;  %v997_v31 = vrot.slane %v983_v24, %v4399_v9 }
 0x3c7   : > { %v998_v32 = vcombine.low %v966_v18, %v981_v22  ;;  %v999_v33 = vcombine.high %v966_v18, %v981_v22  ;;  %v932_v16 = vcombine.low %v915_v3, %v923_v4  ;;  %v1267_v4 = vrot.slane %v4386_v48, %v4390_v60 }
 0x3c8   : > { %v1047_v35 = vrot.slane %v1033_v28, %v4390_v60  ;;  %v1048_v37 = vcombine.low %v1025_v19, %v1040_v29  ;;  %v1049_v38 = vcombine.high %v1025_v19, %v1040_v29  ;;  %v1084_v41 = vcombine.low %v990_v30, %v997_v31 }
 0x3c9   : > { %v1006_v39 = vrot.slane %v998_v32, %v4399_v9  ;;  %v1013_v40 = vrot.slane %v999_v33, %v4399_v9  ;;  %v3420_v42 = vcombine.high %v990_v30, %v997_v31  ;;  %v939_v27 = vrot.slane %v932_v16, %v4399_v9 }
 0x3ca   : > { %v1056_v43 = vrot.slane %v1048_v37, %v4399_v9  ;;  %v1063_v45 = vrot.slane %v1049_v38, %v4399_v9  ;;  %v1064_v46 = vcombine.low %v1032_v20, %v1047_v35  ;;  %v1065_v47 = vcombine.high %v1032_v20, %v1047_v35 }
 0x3cb   : > { %v1091_v49 = vrot.slane %v1084_v41, %v4390_v60  ;;  %v1099_v50 = vrot.slane %v3420_v42, %v4390_v60  ;;  %v1100_v51 = vcombine.low %v1006_v39, %v1013_v40  ;;  %v3421_v52 = vcombine.high %v1006_v39, %v1013_v40 }
 0x3cc   : > { %v1072_v53 = vrot.slane %v1064_v46, %v4399_v9  ;;  %v1079_v54 = vrot.slane %v1065_v47, %v4399_v9  ;;  %v1134_v55 = vcombine.low %v1056_v43, %v1063_v45  ;;  %v3422_v56 = vcombine.high %v1056_v43, %v1063_v45 }
 0x3cd   : > { %v1107_v59 = vrot.slane %v1100_v51, %v4390_v60  ;;  %v1115_v61 = vrot.slane %v3421_v52, %v4390_v60  ;;  %v1116_v10 = vcombine.low %v1091_v49, %v1099_v50  ;;  %v924_v20 = vcombine.low %v899_v12, %v907_v13 }
 0x3ce   : > { %v1141_v62 = vrot.slane %v1134_v55, %v4390_v60  ;;  %v1149_v63 = vrot.slane %v3422_v56, %v4390_v60  ;;  %v1150_v1 = vcombine.low %v1072_v53, %v1079_v54  ;;  %v3423_v2 = vcombine.high %v1072_v53, %v1079_v54 }
 0x3cf   : > { %v1124_v6 = vcombine.low %v1107_v59, %v1115_v61  ;;  %v1123_v17 = vrot.slane %v1116_v10, %v4399_v9  ;;  %v931_v28 = vrot.slane %v924_v20, %v4399_v9  ;;  %v1201_v20 = vrot.slane %v4383_v44, %v4390_v60 }
 0x3d0   : > { %v1157_v7 = vrot.slane %v1150_v1, %v4390_v60  ;;  %v1165_v8 = vrot.slane %v3423_v2, %v4390_v60  ;;  %v1166_v11 = vcombine.low %v1141_v62, %v1149_v63  ;;  %v1260_v63 = vcombine.high %v4386_v48, %v4040_v0 }
 0x3d1   : > { %v1131_v14 = vrot.slane %v1124_v6, %v4399_v9  ;;  %v940_v31 = vcombine.low %v931_v28, %v939_v27  ;;  %v941_v32 = vcombine.high %v931_v28, %v939_v27 }
 0x3d2   : > { %v1174_v15 = vcombine.low %v1157_v7, %v1165_v8  ;;  %v1173_v18 = vrot.slane %v1166_v11, %v4399_v9  ;;  %v1274_v2 = vrot.slane %v1260_v63, %v4390_v60 }
 0x3d3   : > { %v1132_v21 = vcombine.low %v1123_v17, %v1131_v14  ;;  %v1133_v23 = vcombine.high %v1123_v17, %v1131_v14  ;;  %v942_v33 = vpack.c.bf16 %v940_v31, %v940_v31  ;;  %v943_v34 = vpack.c.bf16 %v941_v32, %v941_v32 }
 0x3d4   : > { %v1181_v19 = vrot.slane %v1174_v15, %v4399_v9  ;;  %v1194_v17 = vcombine.high %v4383_v44, %v4040_v0 }
 0x3d6   : > { %v1182_v22 = vcombine.low %v1173_v18, %v1181_v19  ;;  %v1183_v24 = vcombine.high %v1173_v18, %v1181_v19 }
 0x3d8   : > { %v1184_v25 = vpack.c.bf16 %v1182_v22, %v1132_v21  ;;  %v1185_v26 = vpack.c.bf16 %v1183_v24, %v1133_v23 }
 0x3da   : > { %v1433_v29 = vsel %vm1428_vm3, %v1184_v25, 0  ;;  %v1479_v30 = vsel %vm1428_vm3, %v1185_v26, 0  ;;  %v1208_v25 = vrot.slane %v1194_v17, %v4390_v60 }
 0x3db   : > { %3605 = vmatpush3.bf16.xpose.msra.mxu1 %v1433_v29  ;;  %3611 = vmatpush3.bf16.xpose.msra.mxu0 %v1479_v30 }
 0x3dc   : > { %3616 = vmatprep.subr.bf16.mxu1 %v4040_v0  ;;  %3622 = vmatprep.subr.bf16.mxu0 %v4040_v0 }
 0x3e2   : > { %3607 = vmatmul.mubr.msk.bf16.vlgmr.msra.gmra.mxu1 %vm1428_vm3, %v942_v33  ;;  %3613 = vmatmul.mubr.msk.bf16.vlgmr.msra.gmra.mxu0 %vm1428_vm3, %v943_v34 }
 0x3e3   : > { %3618 = vmatprep.mubr.msk.bf16.mxu1 %vm4041_vm0, %v4040_v0  ;;  %3624 = vmatprep.mubr.msk.bf16.mxu0 %vm4041_vm0, %v4040_v0 }
 0x4a2   : > { %v1469_v35 = vpop.f32.mrf.mxu1  ;;  %v1515_v37 = vpop.f32.mrf.mxu0 }
 0x4a3   : > { %v1521_v38 = vmul.f32 0.25, %v1469_v35  ;;  %v1522_v39 = vmul.f32 0.25, %v1515_v37 }
 0x4a4   : > { %v3608_v40 = vpop.f32.mrf.mxu1  ;;  %v3614_v41 = vpop.f32.mrf.mxu0 }
 0x4a5   : > { %v1526_v42 = vsel %vm1428_vm3, %v1522_v39, -inf  ;;  %v1523_v43 = vsel %vm1428_vm3, %v1521_v38, -inf }
 0x4a6   : > { %1527 = vmax.xlane.f32.xlu0 %v1526_v42  ;;  %v1518_v45 = vpop.f32.mrf.mxu0  ;;  %1524 = vmax.xlane.f32.xlu1 %v1523_v43  ;;  %v1472_v46 = vpop.f32.mrf.mxu1 }
 0x4a8   : > { %v3609_v47 = vpop.f32.mrf.mxu1  ;;  %v3615_v49 = vpop.f32.mrf.mxu0 }
 0x4bc   : > { %1190 = vrot.lane.b32.xlu0 %v4386_v48, %s4042_s24 }
 0x52f   : > { %v1528_v50 = vpop.xlane.xlu0 %1527  ;;  %v1525_v51 = vpop.xlane.xlu1 %1524 }
 0x530   : > { %v1530_v52 = vsub.f32 %v1522_v39, %v1528_v50  ;;  %v1529_v53 = vsub.f32 %v1521_v38, %v1525_v51 }
 0x532   : > { %v1531_v54 = vmul.f32 1.442695, %v1529_v53  ;;  %v1533_v55 = vmul.f32 1.442695, %v1530_v52 }
 0x533   : > { %v1191_v61 = vpop.permute.xlu0 %1190 }
 0x534   : > { %3830 = vpow2.f32 %v1531_v54  ;;  %v1275_v62 = vcombine.high %v1191_v61, %v4040_v0  ;;  %v1282_v3 = vrot.slane %v1191_v61, %v4390_v60 }
 0x535   : > { %3832 = vpow2.f32 %v1533_v55 }
 0x536   : > { %v1289_v1 = vrot.slane %v1275_v62, %v4390_v60  ;;  %v1290_v10 = vcombine.low %v1267_v4, %v1282_v3  ;;  %v1291_v11 = vcombine.high %v1267_v4, %v1282_v3 }
 0x538   : > { %v1306_v6 = vcombine.low %v1274_v2, %v1289_v1  ;;  %v1307_v7 = vcombine.high %v1274_v2, %v1289_v1  ;;  %v1298_v15 = vrot.slane %v1290_v10, %v4399_v9  ;;  %v1305_v16 = vrot.slane %v1291_v11, %v4399_v9 }
 0x53a   : > { %v1314_v12 = vrot.slane %v1306_v6, %v4399_v9  ;;  %v1321_v13 = vrot.slane %v1307_v7, %v4399_v9  ;;  %v1376_v23 = vcombine.low %v1298_v15, %v1305_v16  ;;  %v3426_v24 = vcombine.high %v1298_v15, %v1305_v16 }
 0x53c   : > { %v1392_v18 = vcombine.low %v1314_v12, %v1321_v13  ;;  %v3427_v19 = vcombine.high %v1314_v12, %v1321_v13  ;;  %v1383_v34 = vrot.slane %v1376_v23, %v4390_v60  ;;  %v1391_v35 = vrot.slane %v3426_v24, %v4390_v60 }
 0x53e   : > { %v1399_v29 = vrot.slane %v1392_v18, %v4390_v60  ;;  %v1407_v30 = vrot.slane %v3427_v19, %v4390_v60  ;;  %v1408_v47 = vcombine.low %v1383_v34, %v1391_v35 }
 0x540   : > { %v1416_v41 = vcombine.low %v1399_v29, %v1407_v30  ;;  %v1415_v61 = vrot.slane %v1408_v47, %v4399_v9 }
 0x541   : > { %v4455_v56 = vpop.eup %3830 }
 0x542   : > { %v1535_v57 = vsel %vm1428_vm3, %v4455_v56, 0.0  ;;  %v4459_v58 = vpop.eup %3832  ;;  %v1423_v53 = vrot.slane %v1416_v41, %v4399_v9 }
 0x543   : > { %1536 = vadd.xlane.f32.xlu1 %v1535_v57  ;;  %v1538_v59 = vsel %vm1428_vm3, %v4459_v58, 0.0 }
 0x544   : > { %v1424_v63 = vcombine.low %v1415_v61, %v1423_v53  ;;  %v1425_v2 = vcombine.high %v1415_v61, %v1423_v53  ;;  %v3814_v53 = vld [vmem:[%s4820_s2 + $0x38] sm:$0xff]  }
 0x547   : > { %1539 = vadd.xlane.f32.xlu1 %v1538_v59 }
 0x558   : > { %1188 = vrot.lane.b32.xlu1 %v4383_v44, %s4042_s24 }
 0x5cc   : > { %v1537_v8 = vpop.xlane.xlu1 %1536 }
 0x5cd   : > { %3834 = vrcp.f32 %v1537_v8 }
 0x5d0   : > { %v1540_v14 = vpop.xlane.xlu1 %1539 }
 0x5d1   : > { %3836 = vrcp.f32 %v1540_v14 }
 0x5d4   : > { %v1189_v48 = vpop.permute.xlu1 %1188 }
 0x5d5   : > { %v1209_v21 = vcombine.high %v1189_v48, %v4040_v0  ;;  %v1216_v22 = vrot.slane %v1189_v48, %v4390_v60 }
 0x5d7   : > { %v1223_v26 = vrot.slane %v1209_v21, %v4390_v60  ;;  %v1224_v27 = vcombine.low %v1201_v20, %v1216_v22  ;;  %v1225_v28 = vcombine.high %v1201_v20, %v1216_v22 }
 0x5d9   : > { %v1232_v44 = vrot.slane %v1224_v27, %v4399_v9  ;;  %v1239_v31 = vrot.slane %v1225_v28, %v4399_v9  ;;  %v1240_v32 = vcombine.low %v1208_v25, %v1223_v26  ;;  %v1241_v33 = vcombine.high %v1208_v25, %v1223_v26 }
 0x5da   : > { %v3835_v54 = vpop.eup %3834 }
 0x5db   : > { %v1248_v37 = vrot.slane %v1240_v32, %v4399_v9  ;;  %v1255_v38 = vrot.slane %v1241_v33, %v4399_v9  ;;  %v1326_v39 = vcombine.low %v1232_v44, %v1239_v31  ;;  %v3424_v40 = vcombine.high %v1232_v44, %v1239_v31  ;;  %v3811_v32 = vld [vmem:[#allocation8] sm:$0xff]  }
 0x5dc   : > { %v1542_v3 = vmul.f32 %v3835_v54, %v4455_v56  ;;  %v3810_v56 = vld [vmem:[#allocation8 + $0x8] sm:$0xff]   ;;  %v3815_v54 = vld [vmem:[%s4820_s2 + $0x30] sm:$0xff]  }
 0x5dd   : > { %v1333_v42 = vrot.slane %v1326_v39, %v4390_v60  ;;  %v1341_v43 = vrot.slane %v3424_v40, %v4390_v60  ;;  %v1342_v45 = vcombine.low %v1248_v37, %v1255_v38  ;;  %v3425_v46 = vcombine.high %v1248_v37, %v1255_v38  ;;  %v3812_v38 = vld [vmem:[#allocation9 + $0x8] sm:$0xff]  }
 0x5de   : > { %v3837_v55 = vpop.eup %3836  ;;  %v1545_v8 = vpack.c.bf16 %v1542_v3, %v1542_v3  ;;  %v3817_v3 = vld [vmem:[%s4820_s2 + $0x20] sm:$0xff]  }
 0x5df   : > { %v1349_v49 = vrot.slane %v1342_v45, %v4390_v60  ;;  %v1357_v50 = vrot.slane %v3425_v46, %v4390_v60  ;;  %v1358_v51 = vcombine.low %v1333_v42, %v1341_v43  ;;  %v1544_v4 = vmul.f32 %v3837_v55, %v4459_v58  ;;  %v3434_v55 = vld [vmem:[%s4828_s10] ss:$0 sm:$0xff] }
 0x5e1   : > { %v1366_v52 = vcombine.low %v1349_v49, %v1357_v50  ;;  %v1365_v57 = vrot.slane %v1358_v51, %v4399_v9  ;;  %v1546_v10 = vpack.c.bf16 %v1544_v4, %v1544_v4  ;;  %v3438_v4 = vld [vmem:[%s4870_s11] ss:$0 sm:$0xff] }
 0x5e3   : > { %v1373_v59 = vrot.slane %v1366_v52, %v4399_v9  ;;  %v3813_v52 = vld [vmem:[#allocation9] sm:$0xff]  }
 0x5e5   : > { %v1374_v62 = vcombine.low %v1365_v57, %v1373_v59  ;;  %v1375_v1 = vcombine.high %v1365_v57, %v1373_v59 }
 0x5e7   : > { %v1426_v6 = vpack.c.bf16 %v1424_v63, %v1374_v62  ;;  %v1427_v7 = vpack.c.bf16 %v1425_v2, %v1375_v1  ;;  %v3816_v2 = vld [vmem:[%s4820_s2 + $0x28] sm:$0xff]  }
 0x5e9   : > { %3617 = vmatpush3.bf16.msra.mxu1 %v1426_v6  ;;  %3623 = vmatpush3.bf16.msra.mxu0 %v1427_v7 }
 0x5ea   : > { %3628 = vmatprep.subr.bf16.mxu1 %v4040_v0  ;;  %3636 = vmatprep.subr.bf16.mxu0 %v4040_v0 }
 0x5ec   : > { %3619 = vmatmul.mubr.msk.bf16.vlgmr.msra.gmra.mxu1 %vm1428_vm3, %v1545_v8  ;;  %3625 = vmatmul.mubr.msk.bf16.vlgmr.msra.gmra.mxu0 %vm1428_vm3, %v1546_v10 }
 0x5ed   : > { %3632 = vmatprep.mubr.msk.bf16.mxu1 %vm4041_vm0, %v4040_v0  ;;  %3640 = vmatprep.mubr.msk.bf16.mxu0 %vm4041_vm0, %v4040_v0 }
 0x5ee   : > { %3629 = vmatpush3.bf16.msra.mxu1 %v3810_v56  ;;  %3637 = vmatpush3.bf16.msra.mxu0 %v3812_v38 }
 0x5ef   : > { %3630 = vmatprep.subr.bf16.mxu1 %v4040_v0  ;;  %3638 = vmatprep.subr.bf16.mxu0 %v4040_v0 }
 0x5f2   : > { %3631 = vmatpush3.bf16.msra.mxu1 %v3811_v32  ;;  %3639 = vmatpush3.bf16.msra.mxu0 %v3813_v52 }
 0x5f3   : > { %3644 = vmatprep.subr.bf16.mxu1 %v4040_v0  ;;  %3656 = vmatprep.subr.bf16.mxu0 %v4040_v0 }
 0x6ac   : > { %v1584_v58 = vpop.f32.mrf.mxu1  ;;  %v1627_v11 = vpop.f32.mrf.mxu0 }
 0x6ad   : > { %v1633_v12 = vcombine.high %v1584_v58, %v4040_v0  ;;  %v1640_v13 = vrot.slane %v1584_v58, %v4390_v60  ;;  %v1648_v14 = vcombine.high %v1627_v11, %v4040_v0  ;;  %v1655_v15 = vrot.slane %v1627_v11, %v4390_v60 }
 0x6ae   : > { %v3620_v16 = vpop.f32.mrf.mxu1  ;;  %v3626_v17 = vpop.f32.mrf.mxu0 }
 0x6af   : > { %v1647_v18 = vrot.slane %v1633_v12, %v4390_v60  ;;  %v1662_v19 = vrot.slane %v1648_v14, %v4390_v60  ;;  %v1663_v48 = vcombine.low %v1640_v13, %v1655_v15  ;;  %v1664_v20 = vcombine.high %v1640_v13, %v1655_v15  ;;  %v3451_v12 = vld [vmem:[%s4821_s3 + $0x1] ss:$0 sm:$0xff] }
 0x6b0   : > { %v1587_v21 = vpop.f32.mrf.mxu1  ;;  %v1630_v22 = vpop.f32.mrf.mxu0 }
 0x6b1   : > { %v1671_v23 = vrot.slane %v1663_v48, %v4399_v9  ;;  %v1678_v24 = vrot.slane %v1664_v20, %v4399_v9  ;;  %v1679_v25 = vcombine.low %v1647_v18, %v1662_v19  ;;  %v1680_v26 = vcombine.high %v1647_v18, %v1662_v19  ;;  %v3818_v22 = vld [vmem:[%s4824_s6 + $0x18] sm:$0xff]  }
 0x6b2   : > { %v3621_v27 = vpop.f32.mrf.mxu1  ;;  %v3627_v28 = vpop.f32.mrf.mxu0 }
 0x6b3   : > { %v1687_v29 = vrot.slane %v1679_v25, %v4399_v9  ;;  %v1694_v30 = vrot.slane %v1680_v26, %v4399_v9  ;;  %v1699_v44 = vcombine.low %v1671_v23, %v1678_v24  ;;  %v3432_v31 = vcombine.high %v1671_v23, %v1678_v24  ;;  %v3819_v23 = vld [vmem:[%s4824_s6 + $0x10] sm:$0xff]   ;;  %v3821_v24 = vld [vmem:[%s4826_s8 + $0x18] sm:$0xff]  }
 0x6b4   : > { %v3823_v25 = vld [vmem:[%s4826_s8 + $0x10] sm:$0xff]  }
 0x6b5   : > { %v1706_v33 = vrot.slane %v1699_v44, %v4390_v60  ;;  %v1714_v34 = vrot.slane %v3432_v31, %v4390_v60  ;;  %v1715_v35 = vcombine.low %v1687_v29, %v1694_v30  ;;  %v3433_v37 = vcombine.high %v1687_v29, %v1694_v30  ;;  %v3458_v30 = vld [vmem:[%s4822_s4 + $0x1] ss:$0 sm:$0xff] }
 0x6b6   : > { %v3460_v31 = vld [vmem:[%s4823_s5 + $0x1] ss:$0 sm:$0xff] }
 0x6b7   : > { %v1722_v39 = vrot.slane %v1715_v35, %v4390_v60  ;;  %v1730_v40 = vrot.slane %v3433_v37, %v4390_v60  ;;  %v1731_v41 = vcombine.low %v1706_v33, %v1714_v34  ;;  %v3820_v34 = vld [vmem:[%s4825_s7 + $0x18] sm:$0xff]   ;;  %v3822_v37 = vld [vmem:[%s4825_s7 + $0x10] sm:$0xff]  }
 0x6b9   : > { %v1739_v42 = vcombine.low %v1722_v39, %v1730_v40  ;;  %v1738_v43 = vrot.slane %v1731_v41, %v4399_v9 }
 0x6bb   : > { %v1746_v45 = vrot.slane %v1739_v42, %v4399_v9 }
 0x6bd   : > { %v1748_v46 = vcombine.high %v1738_v43, %v1746_v45  ;;  %v1747_v47 = vcombine.low %v1738_v43, %v1746_v45 }
 0x6bf   : > { %1750 = vrot.lane.b32.xlu1 %v1748_v46, %s4045_s19 }
 0x731   : > { %v1751_v49 = vpop.permute.xlu1 %1750 }
 0x732   : > { %v1753_v50 = vsel %vm1428_vm3, %v1747_v47, %v1751_v49 }
 0x733   : > { %v1754_v51 = vpack.c.bf16 %v1753_v50, %v1753_v50 }
 0x735   : > { %3633 = vmatmul.mubr.msk.bf16.vlgmr.msra.gmra.mxu1 %vm524_vm2, %v1754_v51 }
 0x736   : > { %3652 = vmatprep.mubr.msk.bf16.mxu1 %vm4041_vm0, %v4040_v0  ;;  %3645 = vmatpush3.bf16.msra.mxu1 %v3814_v53 }
 0x737   : > { %3646 = vmatprep.subr.bf16.mxu1 %v4040_v0 }
 0x73a   : > { %3647 = vmatpush3.bf16.msra.mxu1 %v3815_v54 }
 0x73b   : > { %3648 = vmatprep.subr.bf16.mxu1 %v4040_v0 }
 0x73e   : > { %3649 = vmatpush3.bf16.msra.mxu1 %v3816_v2 }
 0x73f   : > { %3650 = vmatprep.subr.bf16.mxu1 %v4040_v0 }
 0x742   : > { %3651 = vmatpush3.bf16.msra.mxu1 %v3817_v3 }
 0x743   : > { %3672 = vmatprep.subr.bf16.mxu1 %v4040_v0 }
 0x7f5   : > { %v1815_v57 = vpop.f32.mrf.mxu1 }
 0x7f6   : > { %v1816_v59 = vadd.f32 %v3434_v55, %v1815_v57 }
 0x7f7   : > { %v3634_v61 = vpop.f32.mrf.mxu1 }
 0x7f8   : > { %v1821_v62 = vpack.c.bf16 %v1816_v59, %v1816_v59 }
 0x7f9   : > { %v1818_v63 = vpop.f32.mrf.mxu1 }
 0x7fa   : > { %3641 = vmatmul.mubr.msk.bf16.vlgmr.msra.gmra.mxu0 %vm524_vm2, %v1821_v62 }
 0x7fb   : > { %v3635_v1 = vpop.f32.mrf.mxu1  ;;  %3660 = vmatprep.mubr.msk.bf16.mxu0 %vm4041_vm0, %v4040_v0  ;;  %3657 = vmatpush3.bf16.msra.mxu0 %v3818_v22 }
 0x7fc   : > { %3658 = vmatprep.subr.bf16.mxu0 %v4040_v0 }
 0x7ff   : > { %3659 = vmatpush3.bf16.msra.mxu0 %v3819_v23 }
 0x800   : > { %3664 = vmatprep.subr.bf16.mxu0 %v4040_v0 }
 0x8ba   : > { %v1882_v6 = vpop.f32.mrf.mxu0 }
 0x8bb   : > { %v1883_v7 = vadd.f32 %v3438_v4, %v1882_v6 }
 0x8bc   : > { %v3642_v8 = vpop.f32.mrf.mxu0 }
 0x8bd   : > { %v4562_v10 = vadd.f32 %v1883_v7, %v4322_v5 }
 0x8be   : > { %v1885_v56 = vpop.f32.mrf.mxu0 }
 0x8bf   : > { %v1889_v58 = vpack.c.bf16 %v4562_v10, %v4562_v10 }
 0x8c0   : > { %v3643_v11 = vpop.f32.mrf.mxu0 }
 0x8c1   : > { %3653 = vmatmul.mubr.msk.bf16.vlgmr.msra.gmra.mxu1 %vm567_vm1, %v1889_v58 }
 0x8c2   : > { %3676 = vmatprep.mubr.msk.bf16.mxu1 %vm4041_vm0, %v4040_v0  ;;  %3673 = vmatpush3.bf16.msra.mxu1 %v3821_v24 }
 0x8c3   : > { %3674 = vmatprep.subr.bf16.mxu1 %v4040_v0 }
 0x8c6   : > { %3675 = vmatpush3.bf16.msra.mxu1 %v3823_v25 }
 0x8c7   : > { %3686 = vmatprep.subr.bf16.mxu1 %v4040_v0 }
 0x981   : > { %v1968_v13 = vpop.f32.mrf.mxu1 }
 0x982   : > { %v1969_v14 = vadd.f32 %v3451_v12, %v1968_v13 }
 0x983   : > { %v3654_v15 = vpop.f32.mrf.mxu1 }
 0x984   : > { %v1974_v5 = vsel %vm524_vm2, %v1969_v14, 0.0 }
 0x985   : > { %1975 = vadd.xlane.f32.xlu1 %v1974_v5  ;;  %v1971_v16 = vpop.f32.mrf.mxu1 }
 0x987   : > { %v3655_v17 = vpop.f32.mrf.mxu1 }
 0xa0e   : > { %v1976_v18 = vpop.xlane.xlu1 %1975 }
 0xa0f   : > { %v1977_v19 = vmul.f32 0.03125, %v1976_v18 }
 0xa11   : > { %v1978_v48 = vsub.f32 %v1969_v14, %v1977_v19 }
 0xa13   : > { %v1979_v20 = vmul.f32 %v1978_v48, %v1978_v48 }
 0xa15   : > { %v1980_v21 = vsel %vm524_vm2, %v1979_v20, 0.0 }
 0xa16   : > { %1981 = vadd.xlane.f32.xlu0 %v1980_v21 }
 0xa9f   : > { %v1982_v26 = vpop.xlane.xlu0 %1981 }
 0xaa0   : > { %v1983_v27 = vmul.f32 0.03125, %v1982_v26 }
 0xaa2   : > { %v1984_v28 = vadd.f32 1e-05, %v1983_v27 }
 0xaa4   : > { %3838 = vrsqrt.f32 %v1984_v28 }
 0xab1   : > { %v3839_v29 = vpop.eup %3838 }
 0xab2   : > { %v1986_v44 = vmul.f32 %v3839_v29, %v1978_v48 }
 0xab4   : > { %v1995_v32 = vmul.f32 %v3458_v30, %v1986_v44 }
 0xab6   : > { %v2004_v33 = vadd.f32 %v3460_v31, %v1995_v32 }
 0xab8   : > { %2005 = vst.msk [vmem:[#allocation2] sm:$0xff] %vm524_vm2, %v2004_v33  ;;  %v2009_v35 = vpack.c.bf16 %v2004_v33, %v2004_v33 }
 0xaba   : > { %3661 = vmatmul.mubr.msk.bf16.vlgmr.msra.gmra.mxu0 %vm524_vm2, %v2009_v35 }
 0xabb   : > { %3665 = vmatpush3.bf16.msra.mxu0 %v3820_v34  ;;  %3668 = vmatprep.mubr.msk.bf16.mxu0 %vm4041_vm0, %v4040_v0 }
 0xabc   : > { %3666 = vmatprep.subr.bf16.mxu0 %v4040_v0 }
 0xabf   : > { %3667 = vmatpush3.bf16.msra.mxu0 %v3822_v37  ;;  %v2006_v38 = vld [vmem:[#allocation2] sm:$0xff] }
 0xac0   : > { %v2008_v39 = vpack.c.bf16 %v4372_v36, %v2006_v38  ;;  %3680 = vmatprep.subr.bf16.mxu0 %v4040_v0 }
 0xac2   : > { %3669 = vmatmul.mubr.msk.bf16.vlgmr.msra.gmra.mxu0 %vm524_vm2, %v2008_v39  ;;  %3677 = vmatmul.mubr.msk.bf16.vlgmr.msra.gmra.mxu1 %vm524_vm2, %v2008_v39 }
 0xac3   : > { %3682 = vmatprep.mubr.msk.bf16.mxu0 %vm4041_vm0, %v4040_v0  ;;  %3688 = vmatprep.mubr.msk.bf16.mxu1 %vm4041_vm0, %v4040_v0 }
 0xb7a   : > { %v2064_v40 = vpop.f32.mrf.mxu0 }
 0xb7b   : > { %v2193_v2 = vcombine.high %v2064_v40, %v4040_v0  ;;  %v2200_v3 = vrot.slane %v2064_v40, %v4390_v60 }
 0xb7c   : > { %v3662_v41 = vpop.f32.mrf.mxu0 }
 0xb7d   : > { %v2207_v19 = vrot.slane %v2193_v2, %v4390_v60 }
 0xb7e   : > { %v2067_v42 = vpop.f32.mrf.mxu0 }
 0xb80   : > { %v3663_v43 = vpop.f32.mrf.mxu0 }
 0xb82   : > { %v2124_v45 = vpop.f32.mrf.mxu0  ;;  %v4615_v46 = vpop.f32.mrf.mxu1 }
 0xb83   : > { %2313 = vrot.lane.b32.xlu1 %v2124_v45, %s4042_s24  ;;  %v2319_v53 = vcombine.high %v2124_v45, %v4040_v0  ;;  %v2326_v55 = vrot.slane %v2124_v45, %v4390_v60 }
 0xb84   : > { %v3670_v36 = vpop.f32.mrf.mxu0  ;;  %v3678_v47 = vpop.f32.mrf.mxu1 }
 0xb85   : > { %v2333_v61 = vrot.slane %v2319_v53, %v4390_v60 }
 0xb86   : > { %v2127_v49 = vpop.f32.mrf.mxu0  ;;  %v4618_v50 = vpop.f32.mrf.mxu1 }
 0xb87   : > { %2190 = vrot.lane.b32.xlu1 %v2064_v40, %s4042_s24  ;;  %2315 = vrot.lane.b32.xlu0 %v2127_v49, %s4042_s24  ;;  %v2385_v4 = vcombine.high %v2127_v49, %v4040_v0  ;;  %v2392_v22 = vrot.slane %v2127_v49, %v4390_v60 }
 0xb88   : > { %v3671_v51 = vpop.f32.mrf.mxu0  ;;  %v3679_v52 = vpop.f32.mrf.mxu1 }
 0xb89   : > { %v2399_v23 = vrot.slane %v2385_v4, %v4390_v60 }
 0xbf5   : > { %v2314_v54 = vpop.permute.xlu1 %2313 }
 0xbf6   : > { %v2334_v57 = vcombine.high %v2314_v54, %v4040_v0  ;;  %v2341_v59 = vrot.slane %v2314_v54, %v4390_v60 }
 0xbf8   : > { %v2348_v62 = vrot.slane %v2334_v57, %v4390_v60  ;;  %v2349_v63 = vcombine.low %v2326_v55, %v2341_v59  ;;  %v2350_v1 = vcombine.high %v2326_v55, %v2341_v59 }
 0xbf9   : > { %v2191_v6 = vpop.permute.xlu1 %2190  ;;  %v2316_v11 = vpop.permute.xlu0 %2315 }
 0xbfa   : > { %v2357_v7 = vrot.slane %v2349_v63, %v4399_v9  ;;  %v2364_v8 = vrot.slane %v2350_v1, %v4399_v9  ;;  %v2365_v56 = vcombine.low %v2333_v61, %v2348_v62  ;;  %v2366_v58 = vcombine.high %v2333_v61, %v2348_v62 }
 0xbfb   : > { %v2208_v12 = vcombine.high %v2191_v6, %v4040_v0  ;;  %v2215_v13 = vrot.slane %v2191_v6, %v4390_v60  ;;  %v2400_v14 = vcombine.high %v2316_v11, %v4040_v0  ;;  %v2407_v15 = vrot.slane %v2316_v11, %v4390_v60 }
 0xbfc   : > { %v2373_v5 = vrot.slane %v2365_v56, %v4399_v9  ;;  %v2380_v16 = vrot.slane %v2366_v58, %v4399_v9  ;;  %v2451_v17 = vcombine.low %v2357_v7, %v2364_v8  ;;  %v3484_v18 = vcombine.high %v2357_v7, %v2364_v8 }
 0xbfd   : > { %v2222_v48 = vrot.slane %v2208_v12, %v4390_v60  ;;  %v2223_v20 = vcombine.low %v2200_v3, %v2215_v13  ;;  %v2224_v21 = vcombine.high %v2200_v3, %v2215_v13  ;;  %v2414_v24 = vrot.slane %v2400_v14, %v4390_v60 }
 0xbfe   : > { %v2467_v25 = vcombine.low %v2373_v5, %v2380_v16  ;;  %v3485_v26 = vcombine.high %v2373_v5, %v2380_v16  ;;  %v2458_v29 = vrot.slane %v2451_v17, %v4390_v60  ;;  %v2466_v30 = vrot.slane %v3484_v18, %v4390_v60 }
 0xbff   : > { %v2239_v27 = vcombine.low %v2207_v19, %v2222_v48  ;;  %v2240_v28 = vcombine.high %v2207_v19, %v2222_v48  ;;  %v2415_v44 = vcombine.low %v2392_v22, %v2407_v15  ;;  %v2416_v31 = vcombine.high %v2392_v22, %v2407_v15 }
 0xc00   : > { %v2231_v32 = vrot.slane %v2223_v20, %v4399_v9  ;;  %v2238_v33 = vrot.slane %v2224_v21, %v4399_v9  ;;  %v2431_v39 = vcombine.low %v2399_v23, %v2414_v24  ;;  %v2432_v40 = vcombine.high %v2399_v23, %v2414_v24 }
 0xc01   : > { %v2247_v34 = vrot.slane %v2239_v27, %v4399_v9  ;;  %v2254_v35 = vrot.slane %v2240_v28, %v4399_v9  ;;  %v2423_v37 = vrot.slane %v2415_v44, %v4399_v9  ;;  %v2430_v38 = vrot.slane %v2416_v31, %v4399_v9 }
 0xc02   : > { %v2474_v41 = vrot.slane %v2467_v25, %v4390_v60  ;;  %v2482_v42 = vrot.slane %v3485_v26, %v4390_v60  ;;  %v2439_v36 = vrot.slane %v2431_v39, %v4399_v9  ;;  %v2446_v47 = vrot.slane %v2432_v40, %v4399_v9 }
 0xc03   : > { %v2275_v43 = vcombine.low %v2247_v34, %v2254_v35  ;;  %v3483_v45 = vcombine.high %v2247_v34, %v2254_v35  ;;  %v2501_v49 = vcombine.low %v2423_v37, %v2430_v38  ;;  %v3486_v51 = vcombine.high %v2423_v37, %v2430_v38 }
 0xc04   : > { %v2259_v52 = vcombine.low %v2231_v32, %v2238_v33  ;;  %v3482_v53 = vcombine.high %v2231_v32, %v2238_v33  ;;  %v2517_v57 = vcombine.low %v2439_v36, %v2446_v47  ;;  %v3487_v59 = vcombine.high %v2439_v36, %v2446_v47 }
 0xc05   : > { %v2508_v54 = vrot.slane %v2501_v49, %v4390_v60  ;;  %v2516_v55 = vrot.slane %v3486_v51, %v4390_v60  ;;  %v2282_v61 = vrot.slane %v2275_v43, %v4390_v60  ;;  %v2290_v62 = vrot.slane %v3483_v45, %v4390_v60 }
 0xc06   : > { %v2491_v63 = vcombine.low %v2474_v41, %v2482_v42  ;;  %v2524_v1 = vrot.slane %v2517_v57, %v4390_v60  ;;  %v2532_v2 = vrot.slane %v3487_v59, %v4390_v60  ;;  %v2483_v3 = vcombine.low %v2458_v29, %v2466_v30 }
 0xc07   : > { %v2533_v4 = vcombine.low %v2508_v54, %v2516_v55  ;;  %v2266_v6 = vrot.slane %v2259_v52, %v4390_v60  ;;  %v2274_v7 = vrot.slane %v3482_v53, %v4390_v60  ;;  %v2299_v58 = vcombine.low %v2282_v61, %v2290_v62 }
 0xc08   : > { %v2498_v8 = vrot.slane %v2491_v63, %v4399_v9  ;;  %v2541_v56 = vcombine.low %v2524_v1, %v2532_v2  ;;  %v2490_v11 = vrot.slane %v2483_v3, %v4399_v9  ;;  %v2561_v53 = vcombine.high %v4615_v46, %v4040_v0 }
 0xc09   : > { %v2540_v12 = vrot.slane %v2533_v4, %v4399_v9  ;;  %v2291_v14 = vcombine.low %v2266_v6, %v2274_v7  ;;  %v2306_v48 = vrot.slane %v2299_v58, %v4399_v9  ;;  %v2627_v55 = vcombine.high %v4618_v50, %v4040_v0 }
 0xc0a   : > { %v2548_v13 = vrot.slane %v2541_v56, %v4399_v9  ;;  %v2499_v15 = vcombine.low %v2490_v11, %v2498_v8  ;;  %v2500_v16 = vcombine.high %v2490_v11, %v2498_v8  ;;  %v2568_v59 = vrot.slane %v4615_v46, %v4390_v60 }
 0xc0b   : > { %v2298_v20 = vrot.slane %v2291_v14, %v4399_v9  ;;  %v2575_v61 = vrot.slane %v2561_v53, %v4390_v60  ;;  %v2634_v2 = vrot.slane %v4618_v50, %v4390_v60  ;;  %v2641_v8 = vrot.slane %v2627_v55, %v4390_v60 }
 0xc0c   : > { %v2549_v5 = vcombine.low %v2540_v12, %v2548_v13  ;;  %v2550_v17 = vcombine.high %v2540_v12, %v2548_v13 }
 0xc0d   : > { %v2307_v23 = vcombine.low %v2298_v20, %v2306_v48  ;;  %v2308_v24 = vcombine.high %v2298_v20, %v2306_v48 }
 0xc0e   : > { %v2551_v18 = vpack.c.bf16 %v2549_v5, %v2499_v15  ;;  %v2552_v19 = vpack.c.bf16 %v2550_v17, %v2500_v16 }
 0xc0f   : > { %v2309_v25 = vpack.c.bf16 %v2307_v23, %v2307_v23  ;;  %v2310_v26 = vpack.c.bf16 %v2308_v24, %v2308_v24 }
 0xc10   : > { %v2799_v21 = vsel %vm1428_vm3, %v2551_v18, 0  ;;  %v2845_v22 = vsel %vm1428_vm3, %v2552_v19, 0 }
 0xc11   : > { %3681 = vmatpush3.bf16.xpose.msra.mxu0 %v2799_v21  ;;  %3687 = vmatpush3.bf16.xpose.msra.mxu1 %v2845_v22 }
 0xc12   : > { %3692 = vmatprep.subr.bf16.mxu0 %v4040_v0  ;;  %3698 = vmatprep.subr.bf16.mxu1 %v4040_v0 }
 0xc18   : > { %3683 = vmatmul.mubr.msk.bf16.vlgmr.msra.gmra.mxu0 %vm1428_vm3, %v2309_v25  ;;  %3689 = vmatmul.mubr.msk.bf16.vlgmr.msra.gmra.mxu1 %vm1428_vm3, %v2310_v26 }
 0xc19   : > { %3694 = vmatprep.mubr.msk.bf16.mxu0 %vm4041_vm0, %v4040_v0  ;;  %3700 = vmatprep.mubr.msk.bf16.mxu1 %vm4041_vm0, %v4040_v0 }
 0xcd8   : > { %v2835_v27 = vpop.f32.mrf.mxu0  ;;  %v2881_v28 = vpop.f32.mrf.mxu1 }
 0xcd9   : > { %v2887_v29 = vmul.f32 0.25, %v2835_v27  ;;  %v2888_v30 = vmul.f32 0.25, %v2881_v28 }
 0xcda   : > { %v3684_v44 = vpop.f32.mrf.mxu0  ;;  %v3690_v31 = vpop.f32.mrf.mxu1 }
 0xcdb   : > { %v2889_v32 = vsel %vm1428_vm3, %v2887_v29, -inf  ;;  %v2892_v33 = vsel %vm1428_vm3, %v2888_v30, -inf }
 0xcdc   : > { %2890 = vmax.xlane.f32.xlu1 %v2889_v32  ;;  %v2838_v34 = vpop.f32.mrf.mxu0  ;;  %2893 = vmax.xlane.f32.xlu0 %v2892_v33  ;;  %v2884_v35 = vpop.f32.mrf.mxu1 }
 0xcde   : > { %v3685_v37 = vpop.f32.mrf.mxu0  ;;  %v3691_v38 = vpop.f32.mrf.mxu1 }
 0xd65   : > { %v2891_v39 = vpop.xlane.xlu1 %2890  ;;  %v2894_v40 = vpop.xlane.xlu0 %2893 }
 0xd66   : > { %v2895_v41 = vsub.f32 %v2887_v29, %v2891_v39  ;;  %v2896_v42 = vsub.f32 %v2888_v30, %v2894_v40 }
 0xd68   : > { %v2897_v43 = vmul.f32 1.442695, %v2895_v41  ;;  %v2899_v45 = vmul.f32 1.442695, %v2896_v42 }
 0xd6a   : > { %3840 = vpow2.f32 %v2897_v43 }
 0xd6b   : > { %3842 = vpow2.f32 %v2899_v45 }
 0xd77   : > { %v4682_v36 = vpop.eup %3840 }
 0xd78   : > { %v4684_v47 = vpop.eup %3842  ;;  %v2901_v49 = vsel %vm1428_vm3, %v4682_v36, 0.0 }
 0xd79   : > { %2902 = vadd.xlane.f32.xlu1 %v2901_v49  ;;  %v2904_v51 = vsel %vm1428_vm3, %v4684_v47, 0.0 }
 0xd7a   : > { %2905 = vadd.xlane.f32.xlu0 %v2904_v51 }
 0xd8a   : > { %2555 = vrot.lane.b32.xlu1 %v4615_v46, %s4042_s24 }
 0xd90   : > { %2557 = vrot.lane.b32.xlu0 %v4618_v50, %s4042_s24 }
 0xe02   : > { %v2903_v52 = vpop.xlane.xlu1 %2902 }
 0xe03   : > { %v2906_v54 = vpop.xlane.xlu0 %2905  ;;  %3844 = vrcp.f32 %v2903_v52 }
 0xe04   : > { %3846 = vrcp.f32 %v2906_v54 }
 0xe06   : > { %v2556_v57 = vpop.permute.xlu1 %2555 }
 0xe07   : > { %v2576_v62 = vcombine.high %v2556_v57, %v4040_v0  ;;  %v2583_v63 = vrot.slane %v2556_v57, %v4390_v60  ;;  %v2558_v1 = vpop.permute.xlu0 %2557 }
 0xe08   : > { %v2642_v3 = vcombine.high %v2558_v1, %v4040_v0  ;;  %v2649_v4 = vrot.slane %v2558_v1, %v4390_v60 }
 0xe09   : > { %v2590_v6 = vrot.slane %v2576_v62, %v4390_v60  ;;  %v2591_v7 = vcombine.low %v2568_v59, %v2583_v63  ;;  %v2592_v46 = vcombine.high %v2568_v59, %v2583_v63 }
 0xe0a   : > { %v2656_v56 = vrot.slane %v2642_v3, %v4390_v60  ;;  %v2657_v58 = vcombine.low %v2634_v2, %v2649_v4  ;;  %v2658_v11 = vcombine.high %v2634_v2, %v2649_v4 }
 0xe0b   : > { %v2599_v12 = vrot.slane %v2591_v7, %v4399_v9  ;;  %v2606_v50 = vrot.slane %v2592_v46, %v4399_v9  ;;  %v2607_v13 = vcombine.low %v2575_v61, %v2590_v6  ;;  %v2608_v14 = vcombine.high %v2575_v61, %v2590_v6 }
 0xe0c   : > { %v2665_v15 = vrot.slane %v2657_v58, %v4399_v9  ;;  %v2672_v5 = vrot.slane %v2658_v11, %v4399_v9  ;;  %v2673_v16 = vcombine.low %v2641_v8, %v2656_v56  ;;  %v2674_v17 = vcombine.high %v2641_v8, %v2656_v56 }
 0xe0d   : > { %v2615_v18 = vrot.slane %v2607_v13, %v4399_v9  ;;  %v2622_v19 = vrot.slane %v2608_v14, %v4399_v9  ;;  %v2693_v48 = vcombine.low %v2599_v12, %v2606_v50  ;;  %v3488_v20 = vcombine.high %v2599_v12, %v2606_v50  ;;  %v3825_v14 = vld [vmem:[#allocation8 + $0x10] sm:$0xff]  }
 0xe0e   : > { %v2681_v21 = vrot.slane %v2673_v16, %v4399_v9  ;;  %v2688_v22 = vrot.slane %v2674_v17, %v4399_v9  ;;  %v2743_v23 = vcombine.low %v2665_v15, %v2672_v5  ;;  %v3490_v24 = vcombine.high %v2665_v15, %v2672_v5 }
 0xe0f   : > { %v2700_v25 = vrot.slane %v2693_v48, %v4390_v60  ;;  %v2708_v26 = vrot.slane %v3488_v20, %v4390_v60  ;;  %v2709_v27 = vcombine.low %v2615_v18, %v2622_v19  ;;  %v3489_v28 = vcombine.high %v2615_v18, %v2622_v19 }
 0xe10   : > { %v2750_v29 = vrot.slane %v2743_v23, %v4390_v60  ;;  %v2758_v30 = vrot.slane %v3490_v24, %v4390_v60  ;;  %v2759_v44 = vcombine.low %v2681_v21, %v2688_v22  ;;  %v3491_v31 = vcombine.high %v2681_v21, %v2688_v22  ;;  %v3845_v41 = vpop.eup %3844 }
 0xe11   : > { %v2716_v32 = vrot.slane %v2709_v27, %v4390_v60  ;;  %v2724_v33 = vrot.slane %v3489_v28, %v4390_v60  ;;  %v2725_v34 = vcombine.low %v2700_v25, %v2708_v26  ;;  %v3847_v45 = vpop.eup %3846  ;;  %v2908_v57 = vmul.f32 %v3845_v41, %v4682_v36  ;;  %v3824_v36 = vld [vmem:[#allocation8 + $0x18] sm:$0xff]  }
 0xe12   : > { %v2766_v35 = vrot.slane %v2759_v44, %v4390_v60  ;;  %v2774_v37 = vrot.slane %v3491_v31, %v4390_v60  ;;  %v2775_v38 = vcombine.low %v2750_v29, %v2758_v30  ;;  %v2910_v59 = vmul.f32 %v3847_v45, %v4684_v47  ;;  %v3826_v27 = vld [vmem:[#allocation9 + $0x18] sm:$0xff]   ;;  %v3504_v45 = vld [vmem:[%s4870_s11 + $0x1] ss:$0 sm:$0xff] }
 0xe13   : > { %v2733_v39 = vcombine.low %v2716_v32, %v2724_v33  ;;  %v2732_v42 = vrot.slane %v2725_v34, %v4399_v9  ;;  %v2911_v63 = vpack.c.bf16 %v2908_v57, %v2908_v57 }
 0xe14   : > { %v2783_v40 = vcombine.low %v2766_v35, %v2774_v37  ;;  %v2782_v49 = vrot.slane %v2775_v38, %v4399_v9  ;;  %v2912_v1 = vpack.c.bf16 %v2910_v59, %v2910_v59 }
 0xe15   : > { %v2740_v43 = vrot.slane %v2733_v39, %v4399_v9 }
 0xe16   : > { %v2790_v51 = vrot.slane %v2783_v40, %v4399_v9 }
 0xe17   : > { %v2741_v52 = vcombine.low %v2732_v42, %v2740_v43  ;;  %v2742_v53 = vcombine.high %v2732_v42, %v2740_v43 }
 0xe18   : > { %v2791_v54 = vcombine.low %v2782_v49, %v2790_v51  ;;  %v2792_v55 = vcombine.high %v2782_v49, %v2790_v51 }
 0xe1a   : > { %v2793_v61 = vpack.c.bf16 %v2791_v54, %v2741_v52  ;;  %v2794_v62 = vpack.c.bf16 %v2792_v55, %v2742_v53 }
 0xe1c   : > { %3693 = vmatpush3.bf16.msra.mxu0 %v2793_v61  ;;  %3699 = vmatpush3.bf16.msra.mxu1 %v2794_v62 }
 0xe1d   : > { %3704 = vmatprep.subr.bf16.mxu0 %v4040_v0  ;;  %3712 = vmatprep.subr.bf16.mxu1 %v4040_v0 }
 0xe1f   : > { %3695 = vmatmul.mubr.msk.bf16.vlgmr.msra.gmra.mxu0 %vm1428_vm3, %v2911_v63  ;;  %3701 = vmatmul.mubr.msk.bf16.vlgmr.msra.gmra.mxu1 %vm1428_vm3, %v2912_v1 }
 0xe20   : > { %3708 = vmatprep.mubr.msk.bf16.mxu0 %vm4041_vm0, %v4040_v0  ;;  %3716 = vmatprep.mubr.msk.bf16.mxu1 %vm4041_vm0, %v4040_v0 }
 0xe21   : > { %3705 = vmatpush3.bf16.msra.mxu0 %v3824_v36  ;;  %3713 = vmatpush3.bf16.msra.mxu1 %v3826_v27 }
 0xe22   : > { %3706 = vmatprep.subr.bf16.mxu0 %v4040_v0  ;;  %3714 = vmatprep.subr.bf16.mxu1 %v4040_v0 }
 0xe25   : > { %3707 = vmatpush3.bf16.msra.mxu0 %v3825_v14 }
 0xedf   : > { %v2950_v47 = vpop.f32.mrf.mxu0  ;;  %v2993_v2 = vpop.f32.mrf.mxu1 }
 0xee0   : > { %v2999_v3 = vcombine.high %v2950_v47, %v4040_v0  ;;  %v3006_v4 = vrot.slane %v2950_v47, %v4390_v60  ;;  %v3014_v6 = vcombine.high %v2993_v2, %v4040_v0  ;;  %v3021_v7 = vrot.slane %v2993_v2, %v4390_v60  ;;  %v3499_v0 = vld [vmem:[%s4828_s10 + $0x1] ss:$0 sm:$0xff] }
 0xee1   : > { %v3696_v46 = vpop.f32.mrf.mxu0  ;;  %v3702_v8 = vpop.f32.mrf.mxu1 }
 0xee2   : > { %v3013_v56 = vrot.slane %v2999_v3, %v4390_v60  ;;  %v3028_v58 = vrot.slane %v3014_v6, %v4390_v60  ;;  %v3029_v11 = vcombine.low %v3006_v4, %v3021_v7  ;;  %v3030_v12 = vcombine.high %v3006_v4, %v3021_v7 }
 0xee3   : > { %v2953_v50 = vpop.f32.mrf.mxu0  ;;  %v2996_v13 = vpop.f32.mrf.mxu1 }
 0xee4   : > { %v3037_v15 = vrot.slane %v3029_v11, %v4399_v9  ;;  %v3044_v5 = vrot.slane %v3030_v12, %v4399_v9  ;;  %v3045_v16 = vcombine.low %v3013_v56, %v3028_v58  ;;  %v3046_v17 = vcombine.high %v3013_v56, %v3028_v58 }
 0xee5   : > { %v3697_v18 = vpop.f32.mrf.mxu0  ;;  %v3703_v19 = vpop.f32.mrf.mxu1 }
 0xee6   : > { %v3053_v48 = vrot.slane %v3045_v16, %v4399_v9  ;;  %v3060_v20 = vrot.slane %v3046_v17, %v4399_v9  ;;  %v3065_v21 = vcombine.low %v3037_v15, %v3044_v5  ;;  %v3496_v22 = vcombine.high %v3037_v15, %v3044_v5 }
 0xee8   : > { %v3072_v23 = vrot.slane %v3065_v21, %v4390_v60  ;;  %v3080_v24 = vrot.slane %v3496_v22, %v4390_v60  ;;  %v3081_v25 = vcombine.low %v3053_v48, %v3060_v20  ;;  %v3497_v26 = vcombine.high %v3053_v48, %v3060_v20 }
 0xeea   : > { %v3088_v28 = vrot.slane %v3081_v25, %v4390_v60  ;;  %v3096_v29 = vrot.slane %v3497_v26, %v4390_v60  ;;  %v3097_v30 = vcombine.low %v3072_v23, %v3080_v24  ;;  %v3827_v60 = vld [vmem:[#allocation9 + $0x10] sm:$0xff]  }
 0xeeb   : > { %3715 = vmatpush3.bf16.msra.mxu1 %v3827_v60 }
 0xeec   : > { %v3105_v44 = vcombine.low %v3088_v28, %v3096_v29  ;;  %v3104_v31 = vrot.slane %v3097_v30, %v4399_v9 }
 0xeee   : > { %v3112_v32 = vrot.slane %v3105_v44, %v4399_v9 }
 0xef0   : > { %v3114_v33 = vcombine.high %v3104_v31, %v3112_v32  ;;  %v3113_v34 = vcombine.low %v3104_v31, %v3112_v32 }
 0xef2   : > { %3116 = vrot.lane.b32.xlu1 %v3114_v33, %s4045_s19 }
 0xf64   : > { %v3117_v35 = vpop.permute.xlu1 %3116 }
 0xf65   : > { %v3119_v37 = vsel %vm1428_vm3, %v3113_v34, %v3117_v35 }
 0xf66   : > { %v3120_v38 = vpack.c.bf16 %v3119_v37, %v3119_v37 }
 0xf68   : > { %3709 = vmatmul.mubr.msk.bf16.vlgmr.msra.gmra.mxu0 %vm524_vm2, %v3120_v38 }
0x1028   : > { %v3183_v39 = vpop.f32.mrf.mxu0 }
0x1029   : > { %v3184_v9 = vadd.f32 %v3499_v0, %v3183_v39 }
0x102a   : > { %v3710_v40 = vpop.f32.mrf.mxu0 }
0x102b   : > { %v3189_v41 = vpack.c.bf16 %v3184_v9, %v3184_v9 }
0x102c   : > { %v3186_v42 = vpop.f32.mrf.mxu0 }
0x102d   : > { %3717 = vmatmul.mubr.msk.bf16.vlgmr.msra.gmra.mxu1 %vm524_vm2, %v3189_v41 }
0x102e   : > { %v3711_v43 = vpop.f32.mrf.mxu0 }
0x10ed   : > { %v3252_v49 = vpop.f32.mrf.mxu1 }
0x10ee   : > { %v3253_v51 = vadd.f32 %v3504_v45, %v3252_v49 }
0x10ef   : > { %v3718_v52 = vpop.f32.mrf.mxu1 }
0x10f0   : > { %v3258_v53 = vadd.f32 %v3253_v51, %v4562_v10 }
0x10f1   : > { %v3255_v54 = vpop.f32.mrf.mxu1 }
0x10f2   : > { %3259 = vst.msk [vmem:[%s521_s13] sm:$0xff] %vm567_vm1, %v3258_v53 }
0x10f3   : > { %v3719_v55 = vpop.f32.mrf.mxu1 }
0x10f4   : > { %3969 = shalt.err (!%p3966_p4)
}
0x10f5   : > { %s3970_s24 = scalar_lea.hbm %s4774_s27, 128  ;;  %s3974_s19 = scalar_lea.hbm %s4872_s21, 256 }
0x10f6   : > { %p3971_p10 = scmp.ne.s32.totalorder %s4774_s27, %s3970_s24  ;;  %p3975_p11 = scmp.lt.s32.totalorder %s4774_s27, %s4872_s21 }
0x10f7   : > { %p3976_p2 = scmp.lt.s32.totalorder %s3974_s19, %s3970_s24 }
0x10f8   : > { %p3972_p0 = pnand %p3971_p10, %p4873_p7 }
0x10f9   : > { %p3977_p6 = por %p3976_p2, %p3975_p11 }
0x10fa   : > { %p3973_p8 = pneg %p3972_p0 }
0x10fc   : > { %p3978_p12 = pnand %p3977_p6, %p3973_p8 }
0x10fe   : > { %3981 = shalt.err (!%p3978_p12)
}
0x10ff   : > { %3732 = dma.vmem_to_hbm [thread:$0]  (%p4873_p7), %s4776_s20, 128, %s4774_s27, %s3261_s29  }
0x1100 PF: > { %s4874_s13 = sld [smem:[#allocation17_spill]]  ;;  %p4877_p13 = scmp.ge.s32.totalorder %s4032_s28, 2 }
0x1101   : > { %s4875_s23 = sld [smem:[#allocation19_spill]] }
0x1106   : > { %s3286_s9 = sand.u32 1, %s4874_s13  }
0x1107   : > { %p4876_p9 = scmp.ne.s32.totalorder %s4875_s23, 0  ;;  %s3287_s12 = scalar_lea.sflag [#allocation5], %s3286_s9 }
0x1109   : > { %p3749_p5 = pnand %p4877_p13, %p4876_p9 }
0x110b   : > { %p3750_p1 = pneg %p3749_p5 }
0x110d   : > { %4015 = dma.done.wait (%p3750_p1), %s3287_s12, 128  }
0x110e   : > { %4017 = vsyncadd (%p3750_p1), %s3287_s12, 4294967168  ;;  %s4878_s28 = sld [smem:[#allocation20_spill]]  ;;  %s4881_s25 = smov %s4024_s26 }
0x110f   : > { %s4879_s16 = sld [smem:[#allocation18_spill]] }
0x1110   : > { %s4880_s27 = sld [smem:[#allocation22_spill]] }
0x1114   : > { %p30_p3 = scmp.ge.s32.totalorder %s4878_s28, 4  }
0x1115   : > { %s4882_s26 = smov %s4879_s16 }
0x1116   :  { %32 = sbr.rel (!%p30_p3) target bundleno = 13 (0xd), region = 149 }
0x111b   :  { %3292 = vsyncpa [#allocation4], 1 }
0x111c   :  { %3294 = vsyncpa [#allocation4 + $0x1], 1 }
0x111d   :  { %3295 = vsyncpa [#allocation7], 1 }
0x111e   :  { %3297 = vsyncpa [#allocation7 + $0x1], 1 }
0x111f   :  { %3298 = vsyncpa [#allocation10], 1 }
0x1120   :  { %3299 = vsyncpa [#allocation5], 1 }
0x1121   :  { %3301 = vsyncpa [#allocation5 + $0x1], 1 }

</bundles_post_ra>
